<compile_context>
chip_gen: v6e
topology: v6e:2x2x1
jax: 0.10.0
libtpu: 0.0.40
codegen_flags: <defaults>
</compile_context>

<pallas_src>
import functools

import jax
import jax.numpy as jnp
from jax.experimental import pallas as pl
from jax.experimental.pallas import tpu as pltpu


# ---------------------------------------------------------------------------
# Pallas kernel
# ---------------------------------------------------------------------------
def _decoder_layer_kernel(
    num_heads,
    # inputs (bf16 activations, bf16 fused weights, f32 biases / LN params)
    x_ref, enc_ref,
    sa_wqkv, sa_bqkv, sa_wo, sa_bo, ln1_g, ln1_b,
    ca_wq, ca_bq, ca_wkv, ca_bkv, ca_wo, ca_bo, ln2_g, ln2_b,
    fc1_w, fc1_b, fc2_w, fc2_b, ln3_g, ln3_b,
    # outputs
    out_ref, attn_ref,
):
    f32 = jnp.float32
    bf16 = jnp.bfloat16

    x_bf = x_ref[0]          # (T, E) bf16 — one batch element
    enc_bf = enc_ref[0]      # (S, E) bf16
    T, E = x_bf.shape
    H = num_heads
    Dh = E // H
    # NOTE: the 1/sqrt(Dh) q-scale is folded into the Q weights in the wrapper.

    def mm(a_bf, w_ref):
        # bf16 x bf16 on the MXU, f32 accumulation.
        return jnp.dot(a_bf, w_ref[...], preferred_element_type=f32)

    def layer_norm(h, g_ref, b_ref):
        mu = jnp.mean(h, axis=-1, keepdims=True)
        var = jnp.mean((h - mu) ** 2, axis=-1, keepdims=True)
        return (h - mu) * jax.lax.rsqrt(var + 1e-5) * g_ref[...] + b_ref[...]

    def split_heads(x2d):
        # (N, E) -> (H, N, Dh), head-major for batched dots.
        n = x2d.shape[0]
        if Dh % 128 == 0:
            # lane-aligned head dim (production): reshape + leading-dim swap.
            return jnp.swapaxes(x2d.reshape(n, H, Dh), 0, 1)
        # tiny / unaligned head dim: static lane slices + stack (always lowers).
        return jnp.stack([x2d[:, h * Dh:(h + 1) * Dh] for h in range(H)], axis=0)

    def merge_heads(x3d):
        # (H, N, Dh) -> (N, E)
        n = x3d.shape[1]
        if Dh % 128 == 0:
            return jnp.swapaxes(x3d, 0, 1).reshape(n, E)
        return jnp.concatenate([x3d[h] for h in range(H)], axis=-1)

    def attend(q_bf, k_bf, v_bf, wo_ref, bo_ref, causal, want_probs):
        # q_bf: (T, E) bf16 (already q-scaled via folded weights),
        # k_bf/v_bf: (Skv, E) bf16.
        Skv = k_bf.shape[0]
        qh = split_heads(q_bf)            # (H, T, Dh)
        kh = split_heads(k_bf)            # (H, Skv, Dh)
        vh = split_heads(v_bf)            # (H, Skv, Dh)

        # Batched scores: one MXU call for all heads.
        scores = jax.lax.dot_general(
            qh, kh, (((2,), (2,)), ((0,), (0,))),
            preferred_element_type=f32)   # (H, T, Skv) f32

        if causal:
            row = jax.lax.broadcasted_iota(jnp.int32, (T, Skv), 0)
            col = jax.lax.broadcasted_iota(jnp.int32, (T, Skv), 1)
            scores = jnp.where((col <= row)[None, :, :], scores,
                               jnp.float32(-1e9))

        # softmax (f32 math — also the right policy on v5e, no bf16 VPU/EUP)
        scores = scores - jnp.max(scores, axis=-1, keepdims=True)
        p = jnp.exp(scores)
        denom = jnp.sum(p, axis=-1, keepdims=True)
        if want_probs:
            # these probabilities are returned to the caller -> exact division
            p = p / denom
        else:
            # EUP slot instead of the VALU divide path
            p = p * pl.reciprocal(denom, approx=True)

        # Batched context: one MXU call for all heads; keep bf16 before the
        # fused out-projection (halves merge traffic, cast needed anyway).
        ctx = jax.lax.dot_general(
            p.astype(bf16), vh, (((2,), (1,)), ((0,), (0,))),
            preferred_element_type=f32).astype(bf16)      # (H, T, Dh)

        # single fused out-projection: (T,E) x (E,E), full K=E on the MXU
        out = mm(merge_heads(ctx), wo_ref) + bo_ref[...]
        probs = jnp.mean(p, axis=0) if want_probs else None   # (T, Skv)
        return out, probs

    # ---- self-attention block (normalize_before=False -> post-norm) ----
    residual = x_bf.astype(f32)
    qkv_bf = (mm(x_bf, sa_wqkv) + sa_bqkv[...]).astype(bf16)   # (T, 3E), one fused matmul
    h_sa, _ = attend(qkv_bf[:, :E], qkv_bf[:, E:2 * E], qkv_bf[:, 2 * E:],
                     sa_wo, sa_bo, causal=True, want_probs=False)
    h = layer_norm(residual + h_sa, ln1_g, ln1_b)              # f32
    h_bf = h.astype(bf16)                                      # one cast per block

    # ---- encoder (cross) attention block ----
    residual = h
    q2_bf = (mm(h_bf, ca_wq) + ca_bq[...]).astype(bf16)        # (T, E)
    kv_bf = (mm(enc_bf, ca_wkv) + ca_bkv[...]).astype(bf16)    # (S, 2E), one fused matmul
    h_ca, probs = attend(q2_bf, kv_bf[:, :E], kv_bf[:, E:],
                         ca_wo, ca_bo, causal=False, want_probs=True)
    h = layer_norm(residual + h_ca, ln2_g, ln2_b)
    h_bf = h.astype(bf16)

    # ---- FFN block (activation_fn = relu) ----
    # TODO(synk): at production F, tile over F (emit_pipeline / grid axis) so
    # fc1_w/fc2_w stream instead of being fully resident (required on v7x).
    residual = h
    f_bf = jnp.maximum(mm(h_bf, fc1_w) + fc1_b[...], 0.0).astype(bf16)
    f = mm(f_bf, fc2_w) + fc2_b[...]
    h = layer_norm(residual + f, ln3_g, ln3_b)

    out_ref[0] = h
    attn_ref[0] = probs


# ---------------------------------------------------------------------------
# Wrapper (glue): layout conversion, fused weight packing, pallas_call
# ---------------------------------------------------------------------------
def decoder_layer_pallas(x, encoder_out, params, num_heads):
    """x: (T, B, E), encoder_out: (S, B, E) (fairseq layout).
    Returns (out (T, B, E), attn (B, T, S) head-averaged cross-attn, None)."""
    T, B, E = x.shape
    S = encoder_out.shape[0]
    Dh = E // num_heads
    scale = Dh ** -0.5    # fairseq MultiheadAttention q scaling (folded into Wq/bq)

    # batch-major so each grid step processes one full sequence as a (T, E)
    # tile with E on the lane dim.  Activations fed to the kernel in bf16.
    x_bte = jnp.transpose(x, (1, 0, 2)).astype(jnp.bfloat16)
    enc_bse = jnp.transpose(encoder_out, (1, 0, 2)).astype(jnp.bfloat16)

    def tw(w, s=1.0):   # torch nn.Linear weight (out, in) -> (in, out), bf16 for the MXU
        return (jnp.asarray(w, jnp.float32).T * s).astype(jnp.bfloat16)

    def tb(b, s=1.0):   # 1-D bias / LN param (dim,) -> (1, dim), kept f32
        return (jnp.asarray(b, jnp.float32) * s).reshape(1, -1)

    p = params
    # Fused QKV / KV projection weights; q-scale folded into the Q columns.
    sa_wqkv = jnp.concatenate([tw(p["sa_wq"], scale), tw(p["sa_wk"]), tw(p["sa_wv"])], axis=1)
    sa_bqkv = jnp.concatenate([tb(p["sa_bq"], scale), tb(p["sa_bk"]), tb(p["sa_bv"])], axis=1)
    ca_wkv = jnp.concatenate([tw(p["ca_wk"]), tw(p["ca_wv"])], axis=1)
    ca_bkv = jnp.concatenate([tb(p["ca_bk"]), tb(p["ca_bv"])], axis=1)

    param_list = [
        sa_wqkv, sa_bqkv, tw(p["sa_wo"]), tb(p["sa_bo"]), tb(p["ln1_g"]), tb(p["ln1_b"]),
        tw(p["ca_wq"], scale), tb(p["ca_bq"], scale), ca_wkv, ca_bkv,
        tw(p["ca_wo"]), tb(p["ca_bo"]), tb(p["ln2_g"]), tb(p["ln2_b"]),
        tw(p["fc1_w"]), tb(p["fc1_b"]), tw(p["fc2_w"]), tb(p["fc2_b"]),
        tb(p["ln3_g"]), tb(p["ln3_b"]),
    ]

    def rep(shape):  # replicated (grid-invariant) full-array block
        # TODO(synk): at production sizes add pipeline_mode=pl.Buffered(1) here
        # (grid-invariant weights need no double-buffer; required on v7x).
        n = len(shape)
        return pl.BlockSpec(shape, lambda b, _n=n: (0,) * _n)

    in_specs = [
        pl.BlockSpec((1, T, E), lambda b: (b, 0, 0)),
        pl.BlockSpec((1, S, E), lambda b: (b, 0, 0)),
    ] + [rep(tuple(w.shape)) for w in param_list]

    # TODO(synk): pad S / E to multiples of 128 for lane-dense (unmasked)
    # output stores at production sizes.
    out_specs = (
        pl.BlockSpec((1, T, E), lambda b: (b, 0, 0)),
        pl.BlockSpec((1, T, S), lambda b: (b, 0, 0)),
    )
    out_shapes = (
        jax.ShapeDtypeStruct((B, T, E), jnp.float32),
        jax.ShapeDtypeStruct((B, T, S), jnp.float32),
    )

    # VMEM budget derived from the actual buffer sum (double-buffered inputs/
    # outputs + headroom) instead of a fixed constant; clamped for v5e/v6e
    # physical VMEM.  On v7x (64 MiB) cap ~56 MiB and stream the FFN weights.
    def nbytes(a):
        return int(a.size) * jnp.dtype(a.dtype).itemsize
    weight_bytes = sum(nbytes(w) for w in param_list)
    io_block_bytes = (T * E + S * E) * 2 + (T * E + T * S) * 4
    vmem_limit_bytes = int(min(max(2 * (weight_bytes + io_block_bytes) + (8 << 20),
                                   32 << 20), 100 << 20))

    kernel = functools.partial(_decoder_layer_kernel, num_heads)
    out_bte, attn_bts = pl.pallas_call(
        kernel,
        grid=(B,),
        in_specs=in_specs,
        out_specs=out_specs,
        out_shape=out_shapes,
        compiler_params=pltpu.CompilerParams(
            dimension_semantics=("parallel",),
            vmem_limit_bytes=vmem_limit_bytes),
    )(x_bte, enc_bse, *param_list)

    return jnp.transpose(out_bte, (1, 0, 2)), attn_bts, None


# ---------------------------------------------------------------------------
# Pure-JAX f32 reference (mirrors the PyTorch forward) for correctness check
# ---------------------------------------------------------------------------
def _softmax_last(s):
    s = s - jnp.max(s, axis=-1, keepdims=True)
    e = jnp.exp(s)
    return e / jnp.sum(e, axis=-1, keepdims=True)


def reference_forward(x, encoder_out, params, num_heads):
    T, B, E = x.shape
    H = num_heads
    Dh = E // H
    scale = Dh ** -0.5
    p = params

    def linear(h, w, b):
        return h @ jnp.asarray(w).T + jnp.asarray(b)

    def layer_norm(h, g, b):
        mu = jnp.mean(h, -1, keepdims=True)
        var = jnp.mean((h - mu) ** 2, -1, keepdims=True)
        return (h - mu) / jnp.sqrt(var + 1e-5) * g + b

    def mha(q_in, kv_in, wq, bq, wk, bk, wv, bv, wo, bo, mask):
        Tq, S_ = q_in.shape[0], kv_in.shape[0]
        q = linear(q_in, wq, bq) * scale
        k = linear(kv_in, wk, bk)
        v = linear(kv_in, wv, bv)
        q = q.reshape(Tq, B, H, Dh).transpose(1, 2, 0, 3)
        k = k.reshape(S_, B, H, Dh).transpose(1, 2, 0, 3)
        v = v.reshape(S_, B, H, Dh).transpose(1, 2, 0, 3)
        s = jnp.einsum('bhtd,bhsd->bhts', q, k)
        if mask is not None:
            s = s + mask
        pr = _softmax_last(s)
        o = jnp.einsum('bhts,bhsd->bhtd', pr, v)
        o = o.transpose(2, 0, 1, 3).reshape(Tq, B, E)
        return linear(o, wo, bo), pr.mean(axis=1)

    mask = jnp.where(jnp.triu(jnp.ones((T, T), dtype=bool), 1), -1e9, 0.0)

    residual = x
    h, _ = mha(x, x, p["sa_wq"], p["sa_bq"], p["sa_wk"], p["sa_bk"],
               p["sa_wv"], p["sa_bv"], p["sa_wo"], p["sa_bo"], mask)
    h = layer_norm(residual + h, p["ln1_g"], p["ln1_b"])

    residual = h
    h2, attn = mha(h, encoder_out, p["ca_wq"], p["ca_bq"], p["ca_wk"], p["ca_bk"],
                   p["ca_wv"], p["ca_bv"], p["ca_wo"], p["ca_bo"], None)
    h = layer_norm(residual + h2, p["ln2_g"], p["ln2_b"])

    residual = h
    f = jnp.maximum(linear(h, p["fc1_w"], p["fc1_b"]), 0.0)
    f = linear(f, p["fc2_w"], p["fc2_b"])
    h = layer_norm(residual + f, p["ln3_g"], p["ln3_b"])
    return h, attn


# ---------------------------------------------------------------------------
# Deterministic parameter init (shapes from TransformerDecoderLayer.__init__)
# ---------------------------------------------------------------------------
def init_params(key, E, F):
    ks = list(jax.random.split(key, 32))
    it = iter(ks)

    def lin(out_dim, in_dim):
        kw, kb = next(it), next(it)
        return (jax.random.normal(kw, (out_dim, in_dim), jnp.float32) * 0.05,
                jax.random.normal(kb, (out_dim,), jnp.float32) * 0.02)

    params = {}
    for pre in ("sa", "ca"):                       # self / encoder attention
        for name in ("q", "k", "v", "o"):
            w, b = lin(E, E)
            params[f"{pre}_w{name}"] = w
            params[f"{pre}_b{name}"] = b
    params["fc1_w"], params["fc1_b"] = lin(F, E)
    params["fc2_w"], params["fc2_b"] = lin(E, F)
    for i in (1, 2, 3):                            # three LayerNorms
        kg, kb = next(it), next(it)
        params[f"ln{i}_g"] = 1.0 + 0.1 * jax.random.normal(kg, (E,), jnp.float32)
        params[f"ln{i}_b"] = 0.05 * jax.random.normal(kb, (E,), jnp.float32)
    return params


if __name__ == "__main__":
    T, B, E, H, F, S = 8, 2, 32, 4, 64, 8   # seq, batch, embed, heads, ffn, src_len
    key = jax.random.PRNGKey(0)
    kx, ke, kp = jax.random.split(key, 3)
    x = jax.random.normal(kx, (T, B, E), jnp.float32)
    encoder_out = jax.random.normal(ke, (S, B, E), jnp.float32)
    params = init_params(kp, E, F)

    out, attn, _ = decoder_layer_pallas(x, encoder_out, params, H)
    out = jax.block_until_ready(out)
    attn = jax.block_until_ready(attn)

    ref_out, ref_attn = reference_forward(x, encoder_out, params, H)
    assert out.shape == (T, B, E) and attn.shape == (B, T, S)
    # bf16 MXU inputs (f32 accumulation) -> looser tolerances than pure f32.
    # The returned cross-attn probabilities use the exact softmax denominator.
    assert float(jnp.max(jnp.abs(out - ref_out))) < 1e-1
    assert float(jnp.max(jnp.abs(attn - ref_attn))) < 2.5e-2
    print("KERNEL_OK")
</pallas_src>

<mosaic_0001>
module attributes {stable_mosaic.version = 11 : i64} {
  func.func @_decoder_layer_kernel(%arg0: i32, %arg1: memref<1x8x32xbf16, #tpu.memory_space<vmem>>, %arg2: memref<1x8x32xbf16, #tpu.memory_space<vmem>>, %arg3: memref<32x96xbf16, #tpu.memory_space<vmem>>, %arg4: memref<1x96xf32, #tpu.memory_space<vmem>>, %arg5: memref<32x32xbf16, #tpu.memory_space<vmem>>, %arg6: memref<1x32xf32, #tpu.memory_space<vmem>>, %arg7: memref<1x32xf32, #tpu.memory_space<vmem>>, %arg8: memref<1x32xf32, #tpu.memory_space<vmem>>, %arg9: memref<32x32xbf16, #tpu.memory_space<vmem>>, %arg10: memref<1x32xf32, #tpu.memory_space<vmem>>, %arg11: memref<32x64xbf16, #tpu.memory_space<vmem>>, %arg12: memref<1x64xf32, #tpu.memory_space<vmem>>, %arg13: memref<32x32xbf16, #tpu.memory_space<vmem>>, %arg14: memref<1x32xf32, #tpu.memory_space<vmem>>, %arg15: memref<1x32xf32, #tpu.memory_space<vmem>>, %arg16: memref<1x32xf32, #tpu.memory_space<vmem>>, %arg17: memref<32x64xbf16, #tpu.memory_space<vmem>>, %arg18: memref<1x64xf32, #tpu.memory_space<vmem>>, %arg19: memref<64x32xbf16, #tpu.memory_space<vmem>>, %arg20: memref<1x32xf32, #tpu.memory_space<vmem>>, %arg21: memref<1x32xf32, #tpu.memory_space<vmem>>, %arg22: memref<1x32xf32, #tpu.memory_space<vmem>>, %arg23: memref<1x8x32xf32, #tpu.memory_space<vmem>>, %arg24: memref<1x8x8xf32, #tpu.memory_space<vmem>>) attributes {dimension_semantics = [#tpu.dimension_semantics<parallel>], iteration_bounds = array<i64: 2>, scalar_prefetch = 0 : i64, scratch_operands = 0 : i64, tpu.core_type = #tpu.core_type<tc>, window_params = [{transform_indices = @transform_0, window_bounds = array<i64: 1, 8, 32>}, {transform_indices = @transform_1, window_bounds = array<i64: 1, 8, 32>}, {pipeline_mode = #tpu.pipeline_mode<synchronous>, transform_indices = @transform_2, window_bounds = array<i64: 32, 96>}, {pipeline_mode = #tpu.pipeline_mode<synchronous>, transform_indices = @transform_3, window_bounds = array<i64: 1, 96>}, {pipeline_mode = #tpu.pipeline_mode<synchronous>, transform_indices = @transform_4, window_bounds = array<i64: 32, 32>}, {pipeline_mode = #tpu.pipeline_mode<synchronous>, transform_indices = @transform_5, window_bounds = array<i64: 1, 32>}, {pipeline_mode = #tpu.pipeline_mode<synchronous>, transform_indices = @transform_6, window_bounds = array<i64: 1, 32>}, {pipeline_mode = #tpu.pipeline_mode<synchronous>, transform_indices = @transform_7, window_bounds = array<i64: 1, 32>}, {pipeline_mode = #tpu.pipeline_mode<synchronous>, transform_indices = @transform_8, window_bounds = array<i64: 32, 32>}, {pipeline_mode = #tpu.pipeline_mode<synchronous>, transform_indices = @transform_9, window_bounds = array<i64: 1, 32>}, {pipeline_mode = #tpu.pipeline_mode<synchronous>, transform_indices = @transform_10, window_bounds = array<i64: 32, 64>}, {pipeline_mode = #tpu.pipeline_mode<synchronous>, transform_indices = @transform_11, window_bounds = array<i64: 1, 64>}, {pipeline_mode = #tpu.pipeline_mode<synchronous>, transform_indices = @transform_12, window_bounds = array<i64: 32, 32>}, {pipeline_mode = #tpu.pipeline_mode<synchronous>, transform_indices = @transform_13, window_bounds = array<i64: 1, 32>}, {pipeline_mode = #tpu.pipeline_mode<synchronous>, transform_indices = @transform_14, window_bounds = array<i64: 1, 32>}, {pipeline_mode = #tpu.pipeline_mode<synchronous>, transform_indices = @transform_15, window_bounds = array<i64: 1, 32>}, {pipeline_mode = #tpu.pipeline_mode<synchronous>, transform_indices = @transform_16, window_bounds = array<i64: 32, 64>}, {pipeline_mode = #tpu.pipeline_mode<synchronous>, transform_indices = @transform_17, window_bounds = array<i64: 1, 64>}, {pipeline_mode = #tpu.pipeline_mode<synchronous>, transform_indices = @transform_18, window_bounds = array<i64: 64, 32>}, {pipeline_mode = #tpu.pipeline_mode<synchronous>, transform_indices = @transform_19, window_bounds = array<i64: 1, 32>}, {pipeline_mode = #tpu.pipeline_mode<synchronous>, transform_indices = @transform_20, window_bounds = array<i64: 1, 32>}, {pipeline_mode = #tpu.pipeline_mode<synchronous>, transform_indices = @transform_21, window_bounds = array<i64: 1, 32>}, {transform_indices = @transform_22, window_bounds = array<i64: 1, 8, 32>}, {transform_indices = @transform_23, window_bounds = array<i64: 1, 8, 8>}]} {
    %c0 = arith.constant 0 : index
    %c0_0 = arith.constant 0 : index
    %c0_1 = arith.constant 0 : index
    %0 = vector.load %arg1[%c0, %c0_0, %c0_1] : memref<1x8x32xbf16, #tpu.memory_space<vmem>>, vector<1x8x32xbf16>
    %1 = vector.shape_cast %0 : vector<1x8x32xbf16> to vector<8x32xbf16>
    %c0_2 = arith.constant 0 : index
    %c0_3 = arith.constant 0 : index
    %c0_4 = arith.constant 0 : index
    %2 = vector.load %arg2[%c0_2, %c0_3, %c0_4] : memref<1x8x32xbf16, #tpu.memory_space<vmem>>, vector<1x8x32xbf16>
    %3 = vector.shape_cast %2 : vector<1x8x32xbf16> to vector<8x32xbf16>
    %4 = arith.extf %1 : vector<8x32xbf16> to vector<8x32xf32>
    %c0_5 = arith.constant 0 : index
    %c0_6 = arith.constant 0 : index
    %5 = vector.load %arg3[%c0_5, %c0_6] : memref<32x96xbf16, #tpu.memory_space<vmem>>, vector<32x96xbf16>
    %cst = arith.constant dense<0.000000e+00> : vector<8x96xf32>
    %6 = tpu.matmul %1, %5, %cst {dimension_numbers = #tpu.dot_dimension_numbers<[1], [0], [0], [1], [0, 0, 1, 1], [], []>} : vector<8x32xbf16>, vector<32x96xbf16>, vector<8x96xf32> -> vector<8x96xf32>
    %c0_7 = arith.constant 0 : index
    %c0_8 = arith.constant 0 : index
    %7 = vector.load %arg4[%c0_7, %c0_8] : memref<1x96xf32, #tpu.memory_space<vmem>>, vector<1x96xf32>
    %8 = vector.broadcast %7 : vector<1x96xf32> to vector<8x96xf32>
    %9 = arith.addf %6, %8 : vector<8x96xf32>
    %10 = arith.truncf %9 : vector<8x96xf32> to vector<8x96xbf16>
    %11 = vector.extract_strided_slice %10 {offsets = [0, 0], sizes = [8, 32], strides = [1, 1]} : vector<8x96xbf16> to vector<8x32xbf16>
    %12 = vector.extract_strided_slice %10 {offsets = [0, 32], sizes = [8, 32], strides = [1, 1]} : vector<8x96xbf16> to vector<8x32xbf16>
    %13 = vector.extract_strided_slice %10 {offsets = [0, 64], sizes = [8, 32], strides = [1, 1]} : vector<8x96xbf16> to vector<8x32xbf16>
    %14 = vector.extract_strided_slice %11 {offsets = [0, 0], sizes = [8, 8], strides = [1, 1]} : vector<8x32xbf16> to vector<8x8xbf16>
    %15 = vector.extract_strided_slice %11 {offsets = [0, 8], sizes = [8, 8], strides = [1, 1]} : vector<8x32xbf16> to vector<8x8xbf16>
    %16 = vector.extract_strided_slice %11 {offsets = [0, 16], sizes = [8, 8], strides = [1, 1]} : vector<8x32xbf16> to vector<8x8xbf16>
    %17 = vector.extract_strided_slice %11 {offsets = [0, 24], sizes = [8, 8], strides = [1, 1]} : vector<8x32xbf16> to vector<8x8xbf16>
    %18 = vector.shape_cast %14 : vector<8x8xbf16> to vector<1x8x8xbf16>
    %19 = vector.shape_cast %15 : vector<8x8xbf16> to vector<1x8x8xbf16>
    %20 = vector.shape_cast %16 : vector<8x8xbf16> to vector<1x8x8xbf16>
    %21 = vector.shape_cast %17 : vector<8x8xbf16> to vector<1x8x8xbf16>
    %22 = tpu.concatenate %18, %19, %20, %21 in 0 : vector<1x8x8xbf16>, vector<1x8x8xbf16>, vector<1x8x8xbf16>, vector<1x8x8xbf16> -> vector<4x8x8xbf16>
    %23 = vector.extract_strided_slice %12 {offsets = [0, 0], sizes = [8, 8], strides = [1, 1]} : vector<8x32xbf16> to vector<8x8xbf16>
    %24 = vector.extract_strided_slice %12 {offsets = [0, 8], sizes = [8, 8], strides = [1, 1]} : vector<8x32xbf16> to vector<8x8xbf16>
    %25 = vector.extract_strided_slice %12 {offsets = [0, 16], sizes = [8, 8], strides = [1, 1]} : vector<8x32xbf16> to vector<8x8xbf16>
    %26 = vector.extract_strided_slice %12 {offsets = [0, 24], sizes = [8, 8], strides = [1, 1]} : vector<8x32xbf16> to vector<8x8xbf16>
    %27 = vector.shape_cast %23 : vector<8x8xbf16> to vector<1x8x8xbf16>
    %28 = vector.shape_cast %24 : vector<8x8xbf16> to vector<1x8x8xbf16>
    %29 = vector.shape_cast %25 : vector<8x8xbf16> to vector<1x8x8xbf16>
    %30 = vector.shape_cast %26 : vector<8x8xbf16> to vector<1x8x8xbf16>
    %31 = tpu.concatenate %27, %28, %29, %30 in 0 : vector<1x8x8xbf16>, vector<1x8x8xbf16>, vector<1x8x8xbf16>, vector<1x8x8xbf16> -> vector<4x8x8xbf16>
    %32 = vector.extract_strided_slice %13 {offsets = [0, 0], sizes = [8, 8], strides = [1, 1]} : vector<8x32xbf16> to vector<8x8xbf16>
    %33 = vector.extract_strided_slice %13 {offsets = [0, 8], sizes = [8, 8], strides = [1, 1]} : vector<8x32xbf16> to vector<8x8xbf16>
    %34 = vector.extract_strided_slice %13 {offsets = [0, 16], sizes = [8, 8], strides = [1, 1]} : vector<8x32xbf16> to vector<8x8xbf16>
    %35 = vector.extract_strided_slice %13 {offsets = [0, 24], sizes = [8, 8], strides = [1, 1]} : vector<8x32xbf16> to vector<8x8xbf16>
    %36 = vector.shape_cast %32 : vector<8x8xbf16> to vector<1x8x8xbf16>
    %37 = vector.shape_cast %33 : vector<8x8xbf16> to vector<1x8x8xbf16>
    %38 = vector.shape_cast %34 : vector<8x8xbf16> to vector<1x8x8xbf16>
    %39 = vector.shape_cast %35 : vector<8x8xbf16> to vector<1x8x8xbf16>
    %40 = tpu.concatenate %36, %37, %38, %39 in 0 : vector<1x8x8xbf16>, vector<1x8x8xbf16>, vector<1x8x8xbf16>, vector<1x8x8xbf16> -> vector<4x8x8xbf16>
    %cst_9 = arith.constant dense<0.000000e+00> : vector<4x8x8xf32>
    %41 = tpu.matmul %22, %31, %cst_9 {dimension_numbers = #tpu.dot_dimension_numbers<[2], [2], [1], [1], [0, 0, 0, 1, 1, 1], [0], [0]>} : vector<4x8x8xbf16>, vector<4x8x8xbf16>, vector<4x8x8xf32> -> vector<4x8x8xf32>
    %42 = tpu.iota {dimensions = array<i32: 0>} : vector<8x8xi32>
    %43 = tpu.iota {dimensions = array<i32: 1>} : vector<8x8xi32>
    %44 = arith.cmpi sle, %43, %42 : vector<8x8xi32>
    %45 = vector.shape_cast %44 : vector<8x8xi1> to vector<1x8x8xi1>
    %cst_10 = arith.constant -1.000000e+09 : f32
    %46 = vector.shape_cast %45 : vector<1x8x8xi1> to vector<1x8x8xi1>
    %47 = vector.broadcast %46 : vector<1x8x8xi1> to vector<4x8x8xi1>
    %48 = vector.broadcast %cst_10 : f32 to vector<4x8x8xf32>
    %49 = arith.select %47, %41, %48 : vector<4x8x8xi1>, vector<4x8x8xf32>
    %cst_11 = arith.constant dense<0xFF800000> : vector<4x8xf32>
    %50 = vector.multi_reduction <maximumf>, %49, %cst_11 [2] : vector<4x8x8xf32> to vector<4x8xf32>
    %51 = vector.shape_cast %50 : vector<4x8xf32> to vector<4x8x1xf32>
    %52 = vector.broadcast %51 : vector<4x8x1xf32> to vector<4x8x8xf32>
    %53 = arith.subf %49, %52 : vector<4x8x8xf32>
    %54 = math.exp %53 : vector<4x8x8xf32>
    %cst_12 = arith.constant dense<0.000000e+00> : vector<4x8xf32>
    %55 = vector.multi_reduction <add>, %54, %cst_12 [2] : vector<4x8x8xf32> to vector<4x8xf32>
    %56 = vector.shape_cast %55 : vector<4x8xf32> to vector<4x8x1xf32>
    %57 = tpu.reciprocal %56 {approx = true} : vector<4x8x1xf32> -> vector<4x8x1xf32>
    %58 = vector.broadcast %57 : vector<4x8x1xf32> to vector<4x8x8xf32>
    %59 = arith.mulf %54, %58 : vector<4x8x8xf32>
    %60 = arith.truncf %59 : vector<4x8x8xf32> to vector<4x8x8xbf16>
    %cst_13 = arith.constant dense<0.000000e+00> : vector<4x8x8xf32>
    %61 = tpu.matmul %60, %40, %cst_13 {dimension_numbers = #tpu.dot_dimension_numbers<[2], [1], [1], [2], [0, 0, 0, 1, 1, 2], [0], [0]>} : vector<4x8x8xbf16>, vector<4x8x8xbf16>, vector<4x8x8xf32> -> vector<4x8x8xf32>
    %62 = arith.truncf %61 : vector<4x8x8xf32> to vector<4x8x8xbf16>
    %63 = vector.extract_strided_slice %62 {offsets = [0, 0, 0], sizes = [1, 8, 8], strides = [1, 1, 1]} : vector<4x8x8xbf16> to vector<1x8x8xbf16>
    %64 = vector.shape_cast %63 : vector<1x8x8xbf16> to vector<8x8xbf16>
    %65 = vector.extract_strided_slice %62 {offsets = [1, 0, 0], sizes = [1, 8, 8], strides = [1, 1, 1]} : vector<4x8x8xbf16> to vector<1x8x8xbf16>
    %66 = vector.shape_cast %65 : vector<1x8x8xbf16> to vector<8x8xbf16>
    %67 = vector.extract_strided_slice %62 {offsets = [2, 0, 0], sizes = [1, 8, 8], strides = [1, 1, 1]} : vector<4x8x8xbf16> to vector<1x8x8xbf16>
    %68 = vector.shape_cast %67 : vector<1x8x8xbf16> to vector<8x8xbf16>
    %69 = vector.extract_strided_slice %62 {offsets = [3, 0, 0], sizes = [1, 8, 8], strides = [1, 1, 1]} : vector<4x8x8xbf16> to vector<1x8x8xbf16>
    %70 = vector.shape_cast %69 : vector<1x8x8xbf16> to vector<8x8xbf16>
    %71 = tpu.concatenate %64, %66, %68, %70 in 1 : vector<8x8xbf16>, vector<8x8xbf16>, vector<8x8xbf16>, vector<8x8xbf16> -> vector<8x32xbf16>
    %c0_14 = arith.constant 0 : index
    %c0_15 = arith.constant 0 : index
    %72 = vector.load %arg5[%c0_14, %c0_15] : memref<32x32xbf16, #tpu.memory_space<vmem>>, vector<32x32xbf16>
    %cst_16 = arith.constant dense<0.000000e+00> : vector<8x32xf32>
    %73 = tpu.matmul %71, %72, %cst_16 {dimension_numbers = #tpu.dot_dimension_numbers<[1], [0], [0], [1], [0, 0, 1, 1], [], []>} : vector<8x32xbf16>, vector<32x32xbf16>, vector<8x32xf32> -> vector<8x32xf32>
    %c0_17 = arith.constant 0 : index
    %c0_18 = arith.constant 0 : index
    %74 = vector.load %arg6[%c0_17, %c0_18] : memref<1x32xf32, #tpu.memory_space<vmem>>, vector<1x32xf32>
    %75 = vector.broadcast %74 : vector<1x32xf32> to vector<8x32xf32>
    %76 = arith.addf %73, %75 : vector<8x32xf32>
    %77 = arith.addf %4, %76 : vector<8x32xf32>
    %cst_19 = arith.constant dense<0.000000e+00> : vector<8xf32>
    %78 = vector.multi_reduction <add>, %77, %cst_19 [1] : vector<8x32xf32> to vector<8xf32>
    %79 = vector.shape_cast %78 : vector<8xf32> to vector<8x1xf32>
    %cst_20 = arith.constant 3.200000e+01 : f32
    %80 = vector.broadcast %cst_20 : f32 to vector<8x1xf32>
    %81 = arith.divf %79, %80 : vector<8x1xf32>
    %82 = vector.broadcast %81 : vector<8x1xf32> to vector<8x32xf32>
    %83 = arith.subf %77, %82 : vector<8x32xf32>
    %84 = arith.mulf %83, %83 : vector<8x32xf32>
    %cst_21 = arith.constant dense<0.000000e+00> : vector<8xf32>
    %85 = vector.multi_reduction <add>, %84, %cst_21 [1] : vector<8x32xf32> to vector<8xf32>
    %86 = vector.shape_cast %85 : vector<8xf32> to vector<8x1xf32>
    %cst_22 = arith.constant 3.200000e+01 : f32
    %87 = vector.broadcast %cst_22 : f32 to vector<8x1xf32>
    %88 = arith.divf %86, %87 : vector<8x1xf32>
    %89 = vector.broadcast %81 : vector<8x1xf32> to vector<8x32xf32>
    %90 = arith.subf %77, %89 : vector<8x32xf32>
    %cst_23 = arith.constant 9.99999974E-6 : f32
    %91 = vector.broadcast %cst_23 : f32 to vector<8x1xf32>
    %92 = arith.addf %88, %91 : vector<8x1xf32>
    %93 = math.rsqrt %92 : vector<8x1xf32>
    %94 = vector.broadcast %93 : vector<8x1xf32> to vector<8x32xf32>
    %95 = arith.mulf %90, %94 : vector<8x32xf32>
    %c0_24 = arith.constant 0 : index
    %c0_25 = arith.constant 0 : index
    %96 = vector.load %arg7[%c0_24, %c0_25] : memref<1x32xf32, #tpu.memory_space<vmem>>, vector<1x32xf32>
    %97 = vector.broadcast %96 : vector<1x32xf32> to vector<8x32xf32>
    %98 = arith.mulf %95, %97 : vector<8x32xf32>
    %c0_26 = arith.constant 0 : index
    %c0_27 = arith.constant 0 : index
    %99 = vector.load %arg8[%c0_26, %c0_27] : memref<1x32xf32, #tpu.memory_space<vmem>>, vector<1x32xf32>
    %100 = vector.broadcast %99 : vector<1x32xf32> to vector<8x32xf32>
    %101 = arith.addf %98, %100 : vector<8x32xf32>
    %102 = arith.truncf %101 : vector<8x32xf32> to vector<8x32xbf16>
    %c0_28 = arith.constant 0 : index
    %c0_29 = arith.constant 0 : index
    %103 = vector.load %arg9[%c0_28, %c0_29] : memref<32x32xbf16, #tpu.memory_space<vmem>>, vector<32x32xbf16>
    %cst_30 = arith.constant dense<0.000000e+00> : vector<8x32xf32>
    %104 = tpu.matmul %102, %103, %cst_30 {dimension_numbers = #tpu.dot_dimension_numbers<[1], [0], [0], [1], [0, 0, 1, 1], [], []>} : vector<8x32xbf16>, vector<32x32xbf16>, vector<8x32xf32> -> vector<8x32xf32>
    %c0_31 = arith.constant 0 : index
    %c0_32 = arith.constant 0 : index
    %105 = vector.load %arg10[%c0_31, %c0_32] : memref<1x32xf32, #tpu.memory_space<vmem>>, vector<1x32xf32>
    %106 = vector.broadcast %105 : vector<1x32xf32> to vector<8x32xf32>
    %107 = arith.addf %104, %106 : vector<8x32xf32>
    %108 = arith.truncf %107 : vector<8x32xf32> to vector<8x32xbf16>
    %c0_33 = arith.constant 0 : index
    %c0_34 = arith.constant 0 : index
    %109 = vector.load %arg11[%c0_33, %c0_34] : memref<32x64xbf16, #tpu.memory_space<vmem>>, vector<32x64xbf16>
    %cst_35 = arith.constant dense<0.000000e+00> : vector<8x64xf32>
    %110 = tpu.matmul %3, %109, %cst_35 {dimension_numbers = #tpu.dot_dimension_numbers<[1], [0], [0], [1], [0, 0, 1, 1], [], []>} : vector<8x32xbf16>, vector<32x64xbf16>, vector<8x64xf32> -> vector<8x64xf32>
    %c0_36 = arith.constant 0 : index
    %c0_37 = arith.constant 0 : index
    %111 = vector.load %arg12[%c0_36, %c0_37] : memref<1x64xf32, #tpu.memory_space<vmem>>, vector<1x64xf32>
    %112 = vector.broadcast %111 : vector<1x64xf32> to vector<8x64xf32>
    %113 = arith.addf %110, %112 : vector<8x64xf32>
    %114 = arith.truncf %113 : vector<8x64xf32> to vector<8x64xbf16>
    %115 = vector.extract_strided_slice %114 {offsets = [0, 0], sizes = [8, 32], strides = [1, 1]} : vector<8x64xbf16> to vector<8x32xbf16>
    %116 = vector.extract_strided_slice %114 {offsets = [0, 32], sizes = [8, 32], strides = [1, 1]} : vector<8x64xbf16> to vector<8x32xbf16>
    %117 = vector.extract_strided_slice %108 {offsets = [0, 0], sizes = [8, 8], strides = [1, 1]} : vector<8x32xbf16> to vector<8x8xbf16>
    %118 = vector.extract_strided_slice %108 {offsets = [0, 8], sizes = [8, 8], strides = [1, 1]} : vector<8x32xbf16> to vector<8x8xbf16>
    %119 = vector.extract_strided_slice %108 {offsets = [0, 16], sizes = [8, 8], strides = [1, 1]} : vector<8x32xbf16> to vector<8x8xbf16>
    %120 = vector.extract_strided_slice %108 {offsets = [0, 24], sizes = [8, 8], strides = [1, 1]} : vector<8x32xbf16> to vector<8x8xbf16>
    %121 = vector.shape_cast %117 : vector<8x8xbf16> to vector<1x8x8xbf16>
    %122 = vector.shape_cast %118 : vector<8x8xbf16> to vector<1x8x8xbf16>
    %123 = vector.shape_cast %119 : vector<8x8xbf16> to vector<1x8x8xbf16>
    %124 = vector.shape_cast %120 : vector<8x8xbf16> to vector<1x8x8xbf16>
    %125 = tpu.concatenate %121, %122, %123, %124 in 0 : vector<1x8x8xbf16>, vector<1x8x8xbf16>, vector<1x8x8xbf16>, vector<1x8x8xbf16> -> vector<4x8x8xbf16>
    %126 = vector.extract_strided_slice %115 {offsets = [0, 0], sizes = [8, 8], strides = [1, 1]} : vector<8x32xbf16> to vector<8x8xbf16>
    %127 = vector.extract_strided_slice %115 {offsets = [0, 8], sizes = [8, 8], strides = [1, 1]} : vector<8x32xbf16> to vector<8x8xbf16>
    %128 = vector.extract_strided_slice %115 {offsets = [0, 16], sizes = [8, 8], strides = [1, 1]} : vector<8x32xbf16> to vector<8x8xbf16>
    %129 = vector.extract_strided_slice %115 {offsets = [0, 24], sizes = [8, 8], strides = [1, 1]} : vector<8x32xbf16> to vector<8x8xbf16>
    %130 = vector.shape_cast %126 : vector<8x8xbf16> to vector<1x8x8xbf16>
    %131 = vector.shape_cast %127 : vector<8x8xbf16> to vector<1x8x8xbf16>
    %132 = vector.shape_cast %128 : vector<8x8xbf16> to vector<1x8x8xbf16>
    %133 = vector.shape_cast %129 : vector<8x8xbf16> to vector<1x8x8xbf16>
    %134 = tpu.concatenate %130, %131, %132, %133 in 0 : vector<1x8x8xbf16>, vector<1x8x8xbf16>, vector<1x8x8xbf16>, vector<1x8x8xbf16> -> vector<4x8x8xbf16>
    %135 = vector.extract_strided_slice %116 {offsets = [0, 0], sizes = [8, 8], strides = [1, 1]} : vector<8x32xbf16> to vector<8x8xbf16>
    %136 = vector.extract_strided_slice %116 {offsets = [0, 8], sizes = [8, 8], strides = [1, 1]} : vector<8x32xbf16> to vector<8x8xbf16>
    %137 = vector.extract_strided_slice %116 {offsets = [0, 16], sizes = [8, 8], strides = [1, 1]} : vector<8x32xbf16> to vector<8x8xbf16>
    %138 = vector.extract_strided_slice %116 {offsets = [0, 24], sizes = [8, 8], strides = [1, 1]} : vector<8x32xbf16> to vector<8x8xbf16>
    %139 = vector.shape_cast %135 : vector<8x8xbf16> to vector<1x8x8xbf16>
    %140 = vector.shape_cast %136 : vector<8x8xbf16> to vector<1x8x8xbf16>
    %141 = vector.shape_cast %137 : vector<8x8xbf16> to vector<1x8x8xbf16>
    %142 = vector.shape_cast %138 : vector<8x8xbf16> to vector<1x8x8xbf16>
    %143 = tpu.concatenate %139, %140, %141, %142 in 0 : vector<1x8x8xbf16>, vector<1x8x8xbf16>, vector<1x8x8xbf16>, vector<1x8x8xbf16> -> vector<4x8x8xbf16>
    %cst_38 = arith.constant dense<0.000000e+00> : vector<4x8x8xf32>
    %144 = tpu.matmul %125, %134, %cst_38 {dimension_numbers = #tpu.dot_dimension_numbers<[2], [2], [1], [1], [0, 0, 0, 1, 1, 1], [0], [0]>} : vector<4x8x8xbf16>, vector<4x8x8xbf16>, vector<4x8x8xf32> -> vector<4x8x8xf32>
    %cst_39 = arith.constant dense<0xFF800000> : vector<4x8xf32>
    %145 = vector.multi_reduction <maximumf>, %144, %cst_39 [2] : vector<4x8x8xf32> to vector<4x8xf32>
    %146 = vector.shape_cast %145 : vector<4x8xf32> to vector<4x8x1xf32>
    %147 = vector.broadcast %146 : vector<4x8x1xf32> to vector<4x8x8xf32>
    %148 = arith.subf %144, %147 : vector<4x8x8xf32>
    %149 = math.exp %148 : vector<4x8x8xf32>
    %cst_40 = arith.constant dense<0.000000e+00> : vector<4x8xf32>
    %150 = vector.multi_reduction <add>, %149, %cst_40 [2] : vector<4x8x8xf32> to vector<4x8xf32>
    %151 = vector.shape_cast %150 : vector<4x8xf32> to vector<4x8x1xf32>
    %152 = vector.broadcast %151 : vector<4x8x1xf32> to vector<4x8x8xf32>
    %153 = arith.divf %149, %152 : vector<4x8x8xf32>
    %154 = arith.truncf %153 : vector<4x8x8xf32> to vector<4x8x8xbf16>
    %cst_41 = arith.constant dense<0.000000e+00> : vector<4x8x8xf32>
    %155 = tpu.matmul %154, %143, %cst_41 {dimension_numbers = #tpu.dot_dimension_numbers<[2], [1], [1], [2], [0, 0, 0, 1, 1, 2], [0], [0]>} : vector<4x8x8xbf16>, vector<4x8x8xbf16>, vector<4x8x8xf32> -> vector<4x8x8xf32>
    %156 = arith.truncf %155 : vector<4x8x8xf32> to vector<4x8x8xbf16>
    %157 = vector.extract_strided_slice %156 {offsets = [0, 0, 0], sizes = [1, 8, 8], strides = [1, 1, 1]} : vector<4x8x8xbf16> to vector<1x8x8xbf16>
    %158 = vector.shape_cast %157 : vector<1x8x8xbf16> to vector<8x8xbf16>
    %159 = vector.extract_strided_slice %156 {offsets = [1, 0, 0], sizes = [1, 8, 8], strides = [1, 1, 1]} : vector<4x8x8xbf16> to vector<1x8x8xbf16>
    %160 = vector.shape_cast %159 : vector<1x8x8xbf16> to vector<8x8xbf16>
    %161 = vector.extract_strided_slice %156 {offsets = [2, 0, 0], sizes = [1, 8, 8], strides = [1, 1, 1]} : vector<4x8x8xbf16> to vector<1x8x8xbf16>
    %162 = vector.shape_cast %161 : vector<1x8x8xbf16> to vector<8x8xbf16>
    %163 = vector.extract_strided_slice %156 {offsets = [3, 0, 0], sizes = [1, 8, 8], strides = [1, 1, 1]} : vector<4x8x8xbf16> to vector<1x8x8xbf16>
    %164 = vector.shape_cast %163 : vector<1x8x8xbf16> to vector<8x8xbf16>
    %165 = tpu.concatenate %158, %160, %162, %164 in 1 : vector<8x8xbf16>, vector<8x8xbf16>, vector<8x8xbf16>, vector<8x8xbf16> -> vector<8x32xbf16>
    %c0_42 = arith.constant 0 : index
    %c0_43 = arith.constant 0 : index
    %166 = vector.load %arg13[%c0_42, %c0_43] : memref<32x32xbf16, #tpu.memory_space<vmem>>, vector<32x32xbf16>
    %cst_44 = arith.constant dense<0.000000e+00> : vector<8x32xf32>
    %167 = tpu.matmul %165, %166, %cst_44 {dimension_numbers = #tpu.dot_dimension_numbers<[1], [0], [0], [1], [0, 0, 1, 1], [], []>} : vector<8x32xbf16>, vector<32x32xbf16>, vector<8x32xf32> -> vector<8x32xf32>
    %c0_45 = arith.constant 0 : index
    %c0_46 = arith.constant 0 : index
    %168 = vector.load %arg14[%c0_45, %c0_46] : memref<1x32xf32, #tpu.memory_space<vmem>>, vector<1x32xf32>
    %169 = vector.broadcast %168 : vector<1x32xf32> to vector<8x32xf32>
    %170 = arith.addf %167, %169 : vector<8x32xf32>
    %cst_47 = arith.constant dense<0.000000e+00> : vector<8x8xf32>
    %171 = vector.multi_reduction <add>, %153, %cst_47 [0] : vector<4x8x8xf32> to vector<8x8xf32>
    %cst_48 = arith.constant 4.000000e+00 : f32
    %172 = vector.broadcast %cst_48 : f32 to vector<8x8xf32>
    %173 = arith.divf %171, %172 : vector<8x8xf32>
    %174 = arith.addf %101, %170 : vector<8x32xf32>
    %cst_49 = arith.constant dense<0.000000e+00> : vector<8xf32>
    %175 = vector.multi_reduction <add>, %174, %cst_49 [1] : vector<8x32xf32> to vector<8xf32>
    %176 = vector.shape_cast %175 : vector<8xf32> to vector<8x1xf32>
    %cst_50 = arith.constant 3.200000e+01 : f32
    %177 = vector.broadcast %cst_50 : f32 to vector<8x1xf32>
    %178 = arith.divf %176, %177 : vector<8x1xf32>
    %179 = vector.broadcast %178 : vector<8x1xf32> to vector<8x32xf32>
    %180 = arith.subf %174, %179 : vector<8x32xf32>
    %181 = arith.mulf %180, %180 : vector<8x32xf32>
    %cst_51 = arith.constant dense<0.000000e+00> : vector<8xf32>
    %182 = vector.multi_reduction <add>, %181, %cst_51 [1] : vector<8x32xf32> to vector<8xf32>
    %183 = vector.shape_cast %182 : vector<8xf32> to vector<8x1xf32>
    %cst_52 = arith.constant 3.200000e+01 : f32
    %184 = vector.broadcast %cst_52 : f32 to vector<8x1xf32>
    %185 = arith.divf %183, %184 : vector<8x1xf32>
    %186 = vector.broadcast %178 : vector<8x1xf32> to vector<8x32xf32>
    %187 = arith.subf %174, %186 : vector<8x32xf32>
    %cst_53 = arith.constant 9.99999974E-6 : f32
    %188 = vector.broadcast %cst_53 : f32 to vector<8x1xf32>
    %189 = arith.addf %185, %188 : vector<8x1xf32>
    %190 = math.rsqrt %189 : vector<8x1xf32>
    %191 = vector.broadcast %190 : vector<8x1xf32> to vector<8x32xf32>
    %192 = arith.mulf %187, %191 : vector<8x32xf32>
    %c0_54 = arith.constant 0 : index
    %c0_55 = arith.constant 0 : index
    %193 = vector.load %arg15[%c0_54, %c0_55] : memref<1x32xf32, #tpu.memory_space<vmem>>, vector<1x32xf32>
    %194 = vector.broadcast %193 : vector<1x32xf32> to vector<8x32xf32>
    %195 = arith.mulf %192, %194 : vector<8x32xf32>
    %c0_56 = arith.constant 0 : index
    %c0_57 = arith.constant 0 : index
    %196 = vector.load %arg16[%c0_56, %c0_57] : memref<1x32xf32, #tpu.memory_space<vmem>>, vector<1x32xf32>
    %197 = vector.broadcast %196 : vector<1x32xf32> to vector<8x32xf32>
    %198 = arith.addf %195, %197 : vector<8x32xf32>
    %199 = arith.truncf %198 : vector<8x32xf32> to vector<8x32xbf16>
    %c0_58 = arith.constant 0 : index
    %c0_59 = arith.constant 0 : index
    %200 = vector.load %arg17[%c0_58, %c0_59] : memref<32x64xbf16, #tpu.memory_space<vmem>>, vector<32x64xbf16>
    %cst_60 = arith.constant dense<0.000000e+00> : vector<8x64xf32>
    %201 = tpu.matmul %199, %200, %cst_60 {dimension_numbers = #tpu.dot_dimension_numbers<[1], [0], [0], [1], [0, 0, 1, 1], [], []>} : vector<8x32xbf16>, vector<32x64xbf16>, vector<8x64xf32> -> vector<8x64xf32>
    %c0_61 = arith.constant 0 : index
    %c0_62 = arith.constant 0 : index
    %202 = vector.load %arg18[%c0_61, %c0_62] : memref<1x64xf32, #tpu.memory_space<vmem>>, vector<1x64xf32>
    %203 = vector.broadcast %202 : vector<1x64xf32> to vector<8x64xf32>
    %204 = arith.addf %201, %203 : vector<8x64xf32>
    %cst_63 = arith.constant 0.000000e+00 : f32
    %205 = vector.broadcast %cst_63 : f32 to vector<8x64xf32>
    %206 = arith.maximumf %204, %205 : vector<8x64xf32>
    %207 = arith.truncf %206 : vector<8x64xf32> to vector<8x64xbf16>
    %c0_64 = arith.constant 0 : index
    %c0_65 = arith.constant 0 : index
    %208 = vector.load %arg19[%c0_64, %c0_65] : memref<64x32xbf16, #tpu.memory_space<vmem>>, vector<64x32xbf16>
    %cst_66 = arith.constant dense<0.000000e+00> : vector<8x32xf32>
    %209 = tpu.matmul %207, %208, %cst_66 {dimension_numbers = #tpu.dot_dimension_numbers<[1], [0], [0], [1], [0, 0, 1, 1], [], []>} : vector<8x64xbf16>, vector<64x32xbf16>, vector<8x32xf32> -> vector<8x32xf32>
    %c0_67 = arith.constant 0 : index
    %c0_68 = arith.constant 0 : index
    %210 = vector.load %arg20[%c0_67, %c0_68] : memref<1x32xf32, #tpu.memory_space<vmem>>, vector<1x32xf32>
    %211 = vector.broadcast %210 : vector<1x32xf32> to vector<8x32xf32>
    %212 = arith.addf %209, %211 : vector<8x32xf32>
    %213 = arith.addf %198, %212 : vector<8x32xf32>
    %cst_69 = arith.constant dense<0.000000e+00> : vector<8xf32>
    %214 = vector.multi_reduction <add>, %213, %cst_69 [1] : vector<8x32xf32> to vector<8xf32>
    %215 = vector.shape_cast %214 : vector<8xf32> to vector<8x1xf32>
    %cst_70 = arith.constant 3.200000e+01 : f32
    %216 = vector.broadcast %cst_70 : f32 to vector<8x1xf32>
    %217 = arith.divf %215, %216 : vector<8x1xf32>
    %218 = vector.broadcast %217 : vector<8x1xf32> to vector<8x32xf32>
    %219 = arith.subf %213, %218 : vector<8x32xf32>
    %220 = arith.mulf %219, %219 : vector<8x32xf32>
    %cst_71 = arith.constant dense<0.000000e+00> : vector<8xf32>
    %221 = vector.multi_reduction <add>, %220, %cst_71 [1] : vector<8x32xf32> to vector<8xf32>
    %222 = vector.shape_cast %221 : vector<8xf32> to vector<8x1xf32>
    %cst_72 = arith.constant 3.200000e+01 : f32
    %223 = vector.broadcast %cst_72 : f32 to vector<8x1xf32>
    %224 = arith.divf %222, %223 : vector<8x1xf32>
    %225 = vector.broadcast %217 : vector<8x1xf32> to vector<8x32xf32>
    %226 = arith.subf %213, %225 : vector<8x32xf32>
    %cst_73 = arith.constant 9.99999974E-6 : f32
    %227 = vector.broadcast %cst_73 : f32 to vector<8x1xf32>
    %228 = arith.addf %224, %227 : vector<8x1xf32>
    %229 = math.rsqrt %228 : vector<8x1xf32>
    %230 = vector.broadcast %229 : vector<8x1xf32> to vector<8x32xf32>
    %231 = arith.mulf %226, %230 : vector<8x32xf32>
    %c0_74 = arith.constant 0 : index
    %c0_75 = arith.constant 0 : index
    %232 = vector.load %arg21[%c0_74, %c0_75] : memref<1x32xf32, #tpu.memory_space<vmem>>, vector<1x32xf32>
    %233 = vector.broadcast %232 : vector<1x32xf32> to vector<8x32xf32>
    %234 = arith.mulf %231, %233 : vector<8x32xf32>
    %c0_76 = arith.constant 0 : index
    %c0_77 = arith.constant 0 : index
    %235 = vector.load %arg22[%c0_76, %c0_77] : memref<1x32xf32, #tpu.memory_space<vmem>>, vector<1x32xf32>
    %236 = vector.broadcast %235 : vector<1x32xf32> to vector<8x32xf32>
    %237 = arith.addf %234, %236 : vector<8x32xf32>
    %c0_78 = arith.constant 0 : index
    %c0_79 = arith.constant 0 : index
    %c0_80 = arith.constant 0 : index
    %238 = vector.load %arg23[%c0_78, %c0_79, %c0_80] : memref<1x8x32xf32, #tpu.memory_space<vmem>>, vector<1x8x32xf32>
    %239 = vector.shape_cast %238 : vector<1x8x32xf32> to vector<8x32xf32>
    %240 = vector.shape_cast %237 : vector<8x32xf32> to vector<1x8x32xf32>
    tpu.vector_store %arg23[%c0_78, %c0_79, %c0_80], %240 {strides = array<i32>} : memref<1x8x32xf32, #tpu.memory_space<vmem>>, vector<1x8x32xf32>,
    %c0_81 = arith.constant 0 : index
    %c0_82 = arith.constant 0 : index
    %c0_83 = arith.constant 0 : index
    %241 = vector.load %arg24[%c0_81, %c0_82, %c0_83] : memref<1x8x8xf32, #tpu.memory_space<vmem>>, vector<1x8x8xf32>
    %242 = vector.shape_cast %241 : vector<1x8x8xf32> to vector<8x8xf32>
    %243 = vector.shape_cast %173 : vector<8x8xf32> to vector<1x8x8xf32>
    tpu.vector_store %arg24[%c0_81, %c0_82, %c0_83], %243 {strides = array<i32>} : memref<1x8x8xf32, #tpu.memory_space<vmem>>, vector<1x8x8xf32>,
    return
  }
  func.func @transform_0(%arg0: i32) -> (i32, i32, i32) {
    %c0_i32 = arith.constant 0 : i32
    %c0_i32_0 = arith.constant 0 : i32
    %c0_i32_1 = arith.constant 0 : i32
    return %arg0, %c0_i32, %c0_i32_0 : i32, i32, i32
  }
  func.func @transform_1(%arg0: i32) -> (i32, i32, i32) {
    %c0_i32 = arith.constant 0 : i32
    %c0_i32_0 = arith.constant 0 : i32
    %c0_i32_1 = arith.constant 0 : i32
    return %arg0, %c0_i32, %c0_i32_0 : i32, i32, i32
  }
  func.func @transform_2(%arg0: i32) -> (i32, i32) {
    %c0_i32 = arith.constant 0 : i32
    %c0_i32_0 = arith.constant 0 : i32
    %c0_i32_1 = arith.constant 0 : i32
    return %c0_i32, %c0_i32_0 : i32, i32
  }
  func.func @transform_3(%arg0: i32) -> (i32, i32) {
    %c0_i32 = arith.constant 0 : i32
    %c0_i32_0 = arith.constant 0 : i32
    %c0_i32_1 = arith.constant 0 : i32
    return %c0_i32, %c0_i32_0 : i32, i32
  }
  func.func @transform_4(%arg0: i32) -> (i32, i32) {
    %c0_i32 = arith.constant 0 : i32
    %c0_i32_0 = arith.constant 0 : i32
    %c0_i32_1 = arith.constant 0 : i32
    return %c0_i32, %c0_i32_0 : i32, i32
  }
  func.func @transform_5(%arg0: i32) -> (i32, i32) {
    %c0_i32 = arith.constant 0 : i32
    %c0_i32_0 = arith.constant 0 : i32
    %c0_i32_1 = arith.constant 0 : i32
    return %c0_i32, %c0_i32_0 : i32, i32
  }
  func.func @transform_6(%arg0: i32) -> (i32, i32) {
    %c0_i32 = arith.constant 0 : i32
    %c0_i32_0 = arith.constant 0 : i32
    %c0_i32_1 = arith.constant 0 : i32
    return %c0_i32, %c0_i32_0 : i32, i32
  }
  func.func @transform_7(%arg0: i32) -> (i32, i32) {
    %c0_i32 = arith.constant 0 : i32
    %c0_i32_0 = arith.constant 0 : i32
    %c0_i32_1 = arith.constant 0 : i32
    return %c0_i32, %c0_i32_0 : i32, i32
  }
  func.func @transform_8(%arg0: i32) -> (i32, i32) {
    %c0_i32 = arith.constant 0 : i32
    %c0_i32_0 = arith.constant 0 : i32
    %c0_i32_1 = arith.constant 0 : i32
    return %c0_i32, %c0_i32_0 : i32, i32
  }
  func.func @transform_9(%arg0: i32) -> (i32, i32) {
    %c0_i32 = arith.constant 0 : i32
    %c0_i32_0 = arith.constant 0 : i32
    %c0_i32_1 = arith.constant 0 : i32
    return %c0_i32, %c0_i32_0 : i32, i32
  }
  func.func @transform_10(%arg0: i32) -> (i32, i32) {
    %c0_i32 = arith.constant 0 : i32
    %c0_i32_0 = arith.constant 0 : i32
    %c0_i32_1 = arith.constant 0 : i32
    return %c0_i32, %c0_i32_0 : i32, i32
  }
  func.func @transform_11(%arg0: i32) -> (i32, i32) {
    %c0_i32 = arith.constant 0 : i32
    %c0_i32_0 = arith.constant 0 : i32
    %c0_i32_1 = arith.constant 0 : i32
    return %c0_i32, %c0_i32_0 : i32, i32
  }
  func.func @transform_12(%arg0: i32) -> (i32, i32) {
    %c0_i32 = arith.constant 0 : i32
    %c0_i32_0 = arith.constant 0 : i32
    %c0_i32_1 = arith.constant 0 : i32
    return %c0_i32, %c0_i32_0 : i32, i32
  }
  func.func @transform_13(%arg0: i32) -> (i32, i32) {
    %c0_i32 = arith.constant 0 : i32
    %c0_i32_0 = arith.constant 0 : i32
    %c0_i32_1 = arith.constant 0 : i32
    return %c0_i32, %c0_i32_0 : i32, i32
  }
  func.func @transform_14(%arg0: i32) -> (i32, i32) {
    %c0_i32 = arith.constant 0 : i32
    %c0_i32_0 = arith.constant 0 : i32
    %c0_i32_1 = arith.constant 0 : i32
    return %c0_i32, %c0_i32_0 : i32, i32
  }
  func.func @transform_15(%arg0: i32) -> (i32, i32) {
    %c0_i32 = arith.constant 0 : i32
    %c0_i32_0 = arith.constant 0 : i32
    %c0_i32_1 = arith.constant 0 : i32
    return %c0_i32, %c0_i32_0 : i32, i32
  }
  func.func @transform_16(%arg0: i32) -> (i32, i32) {
    %c0_i32 = arith.constant 0 : i32
    %c0_i32_0 = arith.constant 0 : i32
    %c0_i32_1 = arith.constant 0 : i32
    return %c0_i32, %c0_i32_0 : i32, i32
  }
  func.func @transform_17(%arg0: i32) -> (i32, i32) {
    %c0_i32 = arith.constant 0 : i32
    %c0_i32_0 = arith.constant 0 : i32
    %c0_i32_1 = arith.constant 0 : i32
    return %c0_i32, %c0_i32_0 : i32, i32
  }
  func.func @transform_18(%arg0: i32) -> (i32, i32) {
    %c0_i32 = arith.constant 0 : i32
    %c0_i32_0 = arith.constant 0 : i32
    %c0_i32_1 = arith.constant 0 : i32
    return %c0_i32, %c0_i32_0 : i32, i32
  }
  func.func @transform_19(%arg0: i32) -> (i32, i32) {
    %c0_i32 = arith.constant 0 : i32
    %c0_i32_0 = arith.constant 0 : i32
    %c0_i32_1 = arith.constant 0 : i32
    return %c0_i32, %c0_i32_0 : i32, i32
  }
  func.func @transform_20(%arg0: i32) -> (i32, i32) {
    %c0_i32 = arith.constant 0 : i32
    %c0_i32_0 = arith.constant 0 : i32
    %c0_i32_1 = arith.constant 0 : i32
    return %c0_i32, %c0_i32_0 : i32, i32
  }
  func.func @transform_21(%arg0: i32) -> (i32, i32) {
    %c0_i32 = arith.constant 0 : i32
    %c0_i32_0 = arith.constant 0 : i32
    %c0_i32_1 = arith.constant 0 : i32
    return %c0_i32, %c0_i32_0 : i32, i32
  }
  func.func @transform_22(%arg0: i32) -> (i32, i32, i32) {
    %c0_i32 = arith.constant 0 : i32
    %c0_i32_0 = arith.constant 0 : i32
    %c0_i32_1 = arith.constant 0 : i32
    return %arg0, %c0_i32, %c0_i32_0 : i32, i32, i32
  }
  func.func @transform_23(%arg0: i32) -> (i32, i32, i32) {
    %c0_i32 = arith.constant 0 : i32
    %c0_i32_0 = arith.constant 0 : i32
    %c0_i32_1 = arith.constant 0 : i32
    return %arg0, %c0_i32, %c0_i32_0 : i32, i32, i32
  }
}

</mosaic_0001>

<bundles_post_ra>
// kernel: tpu_custom_call.1
= control target key start
LH: loop header
LB: loop body
LE: loop exit
PB: predicated region body
PF: predicated region fallthrough
CT: control target
= control target key end

     0   :  { %s4558_s0 = inlined_call_operand.hbm [shape: bf16[2,8,32], index: 0, kind: input, shape index: {}]   ;;  %s4559_s1 = inlined_call_operand.hbm [shape: bf16[2,8,32], index: 1, kind: input, shape index: {}]   ;;  %s4560_s2 = inlined_call_operand.vmem [shape: bf16[32,96], index: 2, kind: input, shape index: {}]   ;;  %s4561_s3 = inlined_call_operand.hbm [shape: f32[1,96], index: 3, kind: input, shape index: {}]   ;;  %s4562_s4 = inlined_call_operand.vmem [shape: bf16[32,32], index: 4, kind: input, shape index: {}]   ;;  %s4563_s5 = inlined_call_operand.hbm [shape: f32[1,32], index: 5, kind: input, shape index: {}]   ;;  %s4564_s6 = inlined_call_operand.hbm [shape: f32[1,32], index: 6, kind: input, shape index: {}]   ;;  %s4565_s7 = inlined_call_operand.hbm [shape: f32[1,32], index: 7, kind: input, shape index: {}]   ;;  %s4566_s8 = inlined_call_operand.vmem [shape: bf16[32,32], index: 8, kind: input, shape index: {}]   ;;  %s4567_s9 = inlined_call_operand.hbm [shape: f32[1,32], index: 9, kind: input, shape index: {}]   ;;  %s4568_s10 = inlined_call_operand.vmem [shape: bf16[32,64], index: 10, kind: input, shape index: {}]   ;;  %s4569_s11 = inlined_call_operand.hbm [shape: f32[1,64], index: 11, kind: input, shape index: {}]   ;;  %s4570_s12 = inlined_call_operand.hbm [shape: bf16[32,32], index: 12, kind: input, shape index: {}]   ;;  %s4571_s13 = inlined_call_operand.hbm [shape: f32[1,32], index: 13, kind: input, shape index: {}]   ;;  %s4572_s14 = inlined_call_operand.hbm [shape: f32[1,32], index: 14, kind: input, shape index: {}]   ;;  %s4573_s15 = inlined_call_operand.hbm [shape: f32[1,32], index: 15, kind: input, shape index: {}]   ;;  %s4574_s16 = inlined_call_operand.hbm [shape: bf16[32,64], index: 16, kind: input, shape index: {}]   ;;  %s4575_s17 = inlined_call_operand.hbm [shape: f32[1,64], index: 17, kind: input, shape index: {}]   ;;  %s4576_s18 = inlined_call_operand.vmem [shape: bf16[64,32], index: 18, kind: input, shape index: {}]   ;;  %s4577_s19 = inlined_call_operand.vmem [shape: f32[1,32], index: 19, kind: input, shape index: {}]   ;;  %s4578_s20 = inlined_call_operand.vmem [shape: f32[1,32], index: 20, kind: input, shape index: {}]   ;;  %s4579_s21 = inlined_call_operand.vmem [shape: f32[1,32], index: 21, kind: input, shape index: {}]   ;;  %s4580_s22 = inlined_call_operand.hbm [shape: f32[2,8,32], index: 22, kind: output, shape index: {0}]   ;;  %s4581_s23 = inlined_call_operand.hbm [shape: f32[2,8,8], index: 23, kind: output, shape index: {1}]  }
   0x1   :  { %4594 = sst [smem:[#allocation42_spill]] %s4558_s0 }
   0x2   :  { %4595 = sst [smem:[#allocation43_spill]] %s4559_s1 }
   0x3   :  { %4596 = sst [smem:[#allocation44_spill]] %s4560_s2 }
   0x4   :  { %4597 = sst [smem:[#allocation45_spill]] %s4561_s3 }
   0x5   :  { %4598 = sst [smem:[#allocation46_spill]] %s4562_s4 }
   0x6   :  { %4599 = sst [smem:[#allocation47_spill]] %s4563_s5 }
   0x7   :  { %4600 = sst [smem:[#allocation48_spill]] %s4564_s6 }
   0x8   :  { %4601 = sst [smem:[#allocation49_spill]] %s4565_s7 }
   0x9   :  { %4602 = sst [smem:[#allocation50_spill]] %s4567_s9 }
   0xa   :  { %4603 = sst [smem:[#allocation51_spill]] %s4569_s11 }
   0xb   :  { %4604 = sst [smem:[#allocation52_spill]] %s4570_s12 }
   0xc   :  { %4605 = sst [smem:[#allocation53_spill]] %s4571_s13 }
   0xd   :  { %4606 = sst [smem:[#allocation54_spill]] %s4572_s14 }
   0xe   :  { %4607 = sst [smem:[#allocation55_spill]] %s4573_s15 }
   0xf   :  { %4608 = sst [smem:[#allocation56_spill]] %s4574_s16 }
  0x10   :  { %4609 = sst [smem:[#allocation57_spill]] %s4575_s17 }
  0x11   :  { %4610 = sst [smem:[#allocation58_spill]] %s4578_s20 }
  0x12   :  { %4611 = sst [smem:[#allocation59_spill]] %s4579_s21 }
  0x13   :  { %4612 = sst [smem:[#allocation60_spill]] %s4580_s22 }
  0x14   :  { %29 = vsyncpa [#allocation3], 0 }
  0x15   :  { %31 = vsyncpa [#allocation3 + $0x1], 0 }
  0x16   :  { %32 = vsyncpa [#allocation6], 0 }
  0x17   :  { %34 = vsyncpa [#allocation6 + $0x1], 0 }
  0x18   :  { %35 = vsyncpa [#allocation9], 0 }
  0x19   :  { %36 = vsyncpa [#allocation12], 0 }
  0x1a   :  { %37 = vsyncpa [#allocation15], 0 }
  0x1b   :  { %38 = vsyncpa [#allocation18], 0 }
  0x1c   :  { %39 = vsyncpa [#allocation21], 0 }
  0x1d   :  { %40 = vsyncpa [#allocation24], 0 }
  0x1e   :  { %41 = vsyncpa [#allocation4], 0 }
  0x1f   :  { %43 = vsyncpa [#allocation4 + $0x1], 0 }
  0x20   :  { %44 = vsyncpa [#allocation27], 0 }
  0x21   :  { %46 = vsyncpa [#allocation27 + $0x1], 0  ;;  %s3914_s4 = smov 0   ;;  %s3916_s30 = smov 0  }
  0x22   :  { %s3918_s24 = smov 0   ;;  %s3920_s25 = smov 0  }
  0x23 LB: > { %4613 = sst [smem:[#allocation39_spill]] %s3760_s24  ;;  %s3766_s5 = smov [#allocation7]   ;;  %s3764_s25 = sphi %s3920_s25, %s4663_s25   ;;  %s3760_s24 = sphi %s3918_s24, %s4665_s24   ;;  %s3756_s30 = sphi %s3916_s30, %s4667_s30   ;;  %s3752_s4 = sphi %s3914_s4, %s4666_s4  }
  0x24   : > { %s597_s1 = sshll.u32 %s3766_s5, 4  ;;  %s3935_s26 = sadd.s32 4294967295, %s3764_s25   ;;  %s598_s1 = int_to_ptr.vmem [resolvable:$true] %s597_s1 }
  0x25   : > { %p2723_p0 = scmp.ge.s32.totalorder %s3764_s25, 1  ;;  %p4587_p1 = scmp.eq.s32.totalorder %s3935_s26, 0 }
  0x26   : > { %p581_p2 = scmp.lt.s32.totalorder %s3764_s25, 3  ;;  %s3767_s6 = smov [#allocation8]  }
  0x27   : > { %s611_s27 = sshll.u32 %s3767_s6, 4  ;;  %s3768_s7 = smov [#allocation11]   ;;  %s3947_s27 = int_to_ptr.vmem [resolvable:$true] %s611_s27 }
  0x28   : > { %p3940_p3 = pnand %p2723_p0, %p581_p2  ;;  %s633_s28 = sshll.u32 %s3768_s7, 4  ;;  %s3955_s28 = int_to_ptr.vmem [resolvable:$true] %s633_s28 }
  0x29   : > { %s3769_s3 = smov [#allocation14]   ;;  %s3281_s6 = scalar_lea.vmem %s598_s1, 16 }
  0x2a   : > { %s4614_s2 = scalar_select %p3940_p3, 1, 0 }
  0x2b   : > { %p3083_p5 = pneg %p3940_p3  ;;  %s3957_s0 = sshll.u32 %s3769_s3, 4  ;;  %s662_s0 = int_to_ptr.vmem [resolvable:$true] %s3957_s0 }
  0x2c   : > { %p3282_p8 = scmp.ne.s32.totalorder %s598_s1, %s3281_s6  ;;  %s3288_s7 = scalar_lea.vmem %s598_s1, 32 }
  0x2d   : > { %p3951_p6 = pnand %p3083_p5, %p4587_p1  ;;  %p3289_p11 = scmp.lt.s32.totalorder %s598_s1, %s598_s1 }
  0x2e   : > { %p3290_p12 = scmp.lt.s32.totalorder %s3288_s7, %s3281_s6 }
  0x2f   : > { %p3961_p7 = pneg %p3951_p6 }
  0x30   : > { %p3291_p13 = por %p3290_p12, %p3289_p11 }
  0x31   : > { %p3284_p9 = pnand %p3282_p8, %p3961_p7 }
  0x33   : > { %p3285_p10 = pneg %p3284_p9 }
  0x35   : > { %p3292_p0 = pnand %p3291_p13, %p3285_p10 }
  0x37   : > { %3295 = shalt.err (!%p3292_p0)
}
  0x38   : > { %s4617_s21 = sld [smem:[#allocation45_spill]]  ;;  %s3307_s20 = scalar_lea.vmem %s3947_s27, 16 }
  0x39   : > { %p3308_p2 = scmp.ne.s32.totalorder %s3947_s27, %s3307_s20  ;;  %s3314_s6 = scalar_lea.vmem %s3947_s27, 32 }
  0x3a   : > { %p3315_p9 = scmp.lt.s32.totalorder %s3947_s27, %s3947_s27  ;;  %p3316_p10 = scmp.lt.s32.totalorder %s3314_s6, %s3307_s20 }
  0x3b   : > { %p3310_p5 = pnand %p3308_p2, %p3961_p7 }
  0x3c   : > { %p3317_p11 = por %p3316_p10, %p3315_p9 }
  0x3d   : > { %p3311_p8 = pneg %p3310_p5 }
  0x3e   : > { %3086 = dma.hbm_to_vmem [thread:$0]  (!%p3951_p6), %s4617_s21, 16, %s598_s1, [#allocation6]  }
  0x3f   : > { %p3318_p12 = pnand %p3317_p11, %p3311_p8 }
  0x41   : > { %3321 = shalt.err (!%p3318_p12)
}
  0x42   : > { %s4618_s3 = sld [smem:[#allocation47_spill]]  ;;  %s3333_s21 = scalar_lea.vmem %s3955_s28, 16 }
  0x43   : > { %p3334_p13 = scmp.ne.s32.totalorder %s3955_s28, %s3333_s21  ;;  %s3340_s20 = scalar_lea.vmem %s3955_s28, 32 }
  0x44   : > { %p3341_p5 = scmp.lt.s32.totalorder %s3955_s28, %s3955_s28  ;;  %p3342_p8 = scmp.lt.s32.totalorder %s3340_s20, %s3333_s21 }
  0x45   : > { %p3336_p0 = pnand %p3334_p13, %p3961_p7 }
  0x46   : > { %p3343_p9 = por %p3342_p8, %p3341_p5 }
  0x47   : > { %p3337_p2 = pneg %p3336_p0 }
  0x48   : > { %3089 = dma.hbm_to_vmem [thread:$0]  (!%p3951_p6), %s4618_s3, 16, %s3947_s27, [#allocation9]  }
  0x49   : > { %p3344_p10 = pnand %p3343_p9, %p3337_p2 }
  0x4b   : > { %3347 = shalt.err (!%p3344_p10)
}
  0x4c   : > { %s4619_s22 = sld [smem:[#allocation49_spill]]  ;;  %s3770_s27 = smov [#allocation17]  }
  0x4d   : > { %s685_s7 = sshll.u32 %s3770_s27, 4  ;;  %s3359_s3 = scalar_lea.vmem %s662_s0, 16  ;;  %s686_s7 = int_to_ptr.vmem [resolvable:$true] %s685_s7 }
  0x4e   : > { %p3360_p11 = scmp.ne.s32.totalorder %s662_s0, %s3359_s3  ;;  %s3366_s21 = scalar_lea.vmem %s662_s0, 32 }
  0x4f   : > { %p3367_p0 = scmp.lt.s32.totalorder %s662_s0, %s662_s0  ;;  %p3368_p2 = scmp.lt.s32.totalorder %s3366_s21, %s3359_s3 }
  0x50   : > { %p3362_p12 = pnand %p3360_p11, %p3961_p7 }
  0x51   : > { %p3369_p5 = por %p3368_p2, %p3367_p0 }
  0x52   : > { %3095 = dma.hbm_to_vmem [thread:$0]  (!%p3951_p6), %s4619_s22, 16, %s3955_s28, [#allocation12]  }
  0x53   : > { %p3363_p13 = pneg %p3362_p12 }
  0x55   : > { %p3370_p8 = pnand %p3369_p5, %p3363_p13 }
  0x57   : > { %3373 = shalt.err (!%p3370_p8)
}
  0x58   : > { %s4620_s11 = sld [smem:[#allocation51_spill]]  ;;  %s3385_s28 = scalar_lea.vmem %s686_s7, 16 }
  0x59   : > { %p3386_p9 = scmp.ne.s32.totalorder %s686_s7, %s3385_s28  ;;  %s3392_s6 = scalar_lea.vmem %s686_s7, 32 }
  0x5a   : > { %p3393_p12 = scmp.lt.s32.totalorder %s686_s7, %s686_s7  ;;  %p3394_p4 = scmp.lt.s32.totalorder %s3392_s6, %s3385_s28 }
  0x5b   : > { %p3388_p10 = pnand %p3386_p9, %p3961_p7 }
  0x5c   : > { %p3395_p1 = por %p3394_p4, %p3393_p12 }
  0x5d   : > { %p3389_p11 = pneg %p3388_p10 }
  0x5e   : > { %3101 = dma.hbm_to_vmem [thread:$0]  (!%p3951_p6), %s4620_s11, 16, %s662_s0, [#allocation15]  }
  0x5f   : > { %p3396_p0 = pnand %p3395_p1, %p3389_p11 }
  0x61   : > { %3399 = shalt.err (!%p3396_p0)
}
  0x62   : > { %s4621_s13 = sld [smem:[#allocation53_spill]]  ;;  %s3771_s0 = smov [#allocation20]  }
  0x63   : > { %s707_s3 = sshll.u32 %s3771_s0, 4  ;;  %s3772_s21 = smov [#allocation10]   ;;  %s708_s3 = int_to_ptr.vmem [resolvable:$true] %s707_s3 }
  0x64   : > { %s622_s20 = sshll.u32 %s3772_s21, 4  ;;  %s3411_s1 = scalar_lea.vmem %s708_s3, 16  ;;  %s623_s20 = int_to_ptr.vmem [resolvable:$true] %s622_s20 }
  0x65   : > { %p3412_p13 = scmp.ne.s32.totalorder %s708_s3, %s3411_s1  ;;  %s3418_s28 = scalar_lea.vmem %s708_s3, 32 }
  0x66   : > { %p3419_p1 = scmp.lt.s32.totalorder %s708_s3, %s708_s3  ;;  %p3420_p4 = scmp.lt.s32.totalorder %s3418_s28, %s3411_s1 }
  0x67   : > { %p3414_p2 = pnand %p3412_p13, %p3961_p7 }
  0x68   : > { %3107 = dma.hbm_to_vmem [thread:$0]  (!%p3951_p6), %s4621_s13, 16, %s686_s7, [#allocation18]  }
  0x69   : > { %p3415_p5 = pneg %p3414_p2  ;;  %p3421_p8 = por %p3420_p4, %p3419_p1 }
  0x6b   : > { %p3422_p9 = pnand %p3421_p8, %p3415_p5 }
  0x6d   : > { %3425 = shalt.err (!%p3422_p9)
}
  0x6e   : > { %s4622_s15 = sld [smem:[#allocation55_spill]]  ;;  %s3437_s22 = scalar_lea.vmem %s623_s20, 16 }
  0x6f   : > { %p3438_p10 = scmp.ne.s32.totalorder %s623_s20, %s3437_s22  ;;  %s3444_s27 = scalar_lea.vmem %s623_s20, 32 }
  0x70   : > { %p3445_p0 = scmp.lt.s32.totalorder %s623_s20, %s623_s20  ;;  %p3446_p13 = scmp.lt.s32.totalorder %s3444_s27, %s3437_s22 }
  0x71   : > { %p3440_p11 = pnand %p3438_p10, %p3961_p7 }
  0x72   : > { %p3447_p2 = por %p3446_p13, %p3445_p0 }
  0x73   : > { %p3441_p12 = pneg %p3440_p11 }
  0x74   : > { %3113 = dma.hbm_to_vmem [thread:$0]  (!%p3951_p6), %s4622_s15, 16, %s708_s3, [#allocation21]  }
  0x75   : > { %p3448_p1 = pnand %p3447_p2, %p3441_p12 }
  0x77   : > { %3451 = shalt.err (!%p3448_p1)
}
  0x78   : > { %s4623_s1 = sld [smem:[#allocation48_spill]]  ;;  %s3773_s3 = smov [#allocation13]  }
  0x79   : > { %s647_s28 = sshll.u32 %s3773_s3, 4  ;;  %s3774_s6 = smov [#allocation16]   ;;  %s648_s28 = int_to_ptr.vmem [resolvable:$true] %s647_s28 }
  0x7a   : > { %s671_s7 = sshll.u32 %s3774_s6, 4  ;;  %s3463_s11 = scalar_lea.vmem %s648_s28, 16  ;;  %s672_s7 = int_to_ptr.vmem [resolvable:$true] %s671_s7 }
  0x7b   : > { %p3464_p5 = scmp.ne.s32.totalorder %s648_s28, %s3463_s11  ;;  %s3470_s22 = scalar_lea.vmem %s648_s28, 32 }
  0x7c   : > { %p3471_p9 = scmp.lt.s32.totalorder %s648_s28, %s648_s28  ;;  %p3472_p10 = scmp.lt.s32.totalorder %s3470_s22, %s3463_s11 }
  0x7d   : > { %p3466_p4 = pnand %p3464_p5, %p3961_p7 }
  0x7e   : > { %3092 = dma.hbm_to_vmem [thread:$0]  (!%p3951_p6), %s4623_s1, 16, %s623_s20, [#allocation9]  }
  0x7f   : > { %p3467_p8 = pneg %p3466_p4  ;;  %p3473_p11 = por %p3472_p10, %p3471_p9 }
  0x81   : > { %p3474_p12 = pnand %p3473_p11, %p3467_p8 }
  0x83   : > { %3477 = shalt.err (!%p3474_p12)
}
  0x84   : > { %s4624_s9 = sld [smem:[#allocation50_spill]]  ;;  %s3489_s0 = scalar_lea.vmem %s672_s7, 256 }
  0x85   : > { %p3490_p0 = scmp.ne.s32.totalorder %s672_s7, %s3489_s0  ;;  %p3497_p1 = scmp.lt.s32.totalorder %s672_s7, %s672_s7 }
  0x86   : > { %p3498_p5 = scmp.lt.s32.totalorder %s3489_s0, %s3489_s0 }
  0x87   : > { %p3492_p13 = pnand %p3490_p0, %p3961_p7 }
  0x88   : > { %p3499_p4 = por %p3498_p5, %p3497_p1 }
  0x89   : > { %p3493_p2 = pneg %p3492_p13 }
  0x8a   : > { %3098 = dma.hbm_to_vmem [thread:$0]  (!%p3951_p6), %s4624_s9, 16, %s648_s28, [#allocation12]  }
  0x8b   : > { %p3500_p3 = pnand %p3499_p4, %p3493_p2 }
  0x8d   : > { %3503 = shalt.err (!%p3500_p3)
}
  0x8e   : > { %s3775_s11 = smov 64   ;;  %s3776_s21 = smov 4  }
  0x8f   : > { %s4625_s12 = sld [smem:[#allocation52_spill]]  ;;  %s3777_s28 = smov [#allocation19]  }
  0x90   : > { %s696_s6 = sshll.u32 %s3777_s28, 4  ;;  %s3778_s22 = smov [#allocation22]   ;;  %s697_s6 = int_to_ptr.vmem [resolvable:$true] %s696_s6 }
  0x91   : > { %s717_s27 = sshll.u32 %s3778_s22, 4  ;;  %s3515_s20 = scalar_lea.vmem %s697_s6, 16  ;;  %s718_s27 = int_to_ptr.vmem [resolvable:$true] %s717_s27 }
  0x92   : > { %p3516_p8 = scmp.ne.s32.totalorder %s697_s6, %s3515_s20  ;;  %s3522_s0 = scalar_lea.vmem %s697_s6, 32 }
  0x93   : > { %p3523_p10 = scmp.lt.s32.totalorder %s697_s6, %s697_s6  ;;  %p3524_p11 = scmp.lt.s32.totalorder %s3522_s0, %s3515_s20 }
  0x94   : > { %p3518_p3 = pnand %p3516_p8, %p3961_p7 }
  0x95   : > { %3104 = dma.hbm_to_vmem [thread:$0]  (!%p3951_p6), %s4625_s12, 256, %s672_s7, [#allocation15], %s3775_s11, %s3775_s11, %s3776_s21  }
  0x96   : > { %p3519_p9 = pneg %p3518_p3  ;;  %p3525_p12 = por %p3524_p11, %p3523_p10 }
  0x98   : > { %p3526_p0 = pnand %p3525_p12, %p3519_p9 }
  0x9a   : > { %3529 = shalt.err (!%p3526_p0)
}
  0x9b   : > { %s4626_s14 = sld [smem:[#allocation54_spill]]  ;;  %s3541_s3 = scalar_lea.vmem %s718_s27, 256 }
  0x9c   : > { %p3542_p13 = scmp.ne.s32.totalorder %s718_s27, %s3541_s3  ;;  %p3549_p5 = scmp.lt.s32.totalorder %s718_s27, %s718_s27 }
  0x9d   : > { %p3550_p4 = scmp.lt.s32.totalorder %s3541_s3, %s3541_s3 }
  0x9e   : > { %p3544_p2 = pnand %p3542_p13, %p3961_p7 }
  0x9f   : > { %p3551_p8 = por %p3550_p4, %p3549_p5 }
  0xa0   : > { %p3545_p1 = pneg %p3544_p2 }
  0xa1   : > { %3110 = dma.hbm_to_vmem [thread:$0]  (!%p3951_p6), %s4626_s14, 16, %s697_s6, [#allocation18]  }
  0xa2   : > { %p3552_p3 = pnand %p3551_p8, %p3545_p1 }
  0xa4   : > { %3555 = shalt.err (!%p3552_p3)
}
  0xa5   : > { %s4627_s16 = sld [smem:[#allocation56_spill]]  ;;  %s3779_s6 = smov [#allocation23]  }
  0xa6   : > { %s731_s20 = sshll.u32 %s3779_s6, 4  ;;  %s732_s20 = int_to_ptr.vmem [resolvable:$true] %s731_s20 }
  0xa7   : > { %s3567_s0 = scalar_lea.vmem %s732_s20, 16  ;;  %s3574_s1 = scalar_lea.vmem %s732_s20, 32 }
  0xa8   : > { %p3568_p9 = scmp.ne.s32.totalorder %s732_s20, %s3567_s0  ;;  %p3575_p12 = scmp.lt.s32.totalorder %s732_s20, %s732_s20 }
  0xa9   : > { %p3576_p0 = scmp.lt.s32.totalorder %s3574_s1, %s3567_s0 }
  0xaa   : > { %p3570_p10 = pnand %p3568_p9, %p3961_p7 }
  0xab   : > { %3116 = dma.hbm_to_vmem [thread:$0]  (!%p3951_p6), %s4627_s16, 256, %s718_s27, [#allocation21], %s3775_s11, %s3775_s11, %s3776_s21  }
  0xac   : > { %p3571_p11 = pneg %p3570_p10  ;;  %p3577_p13 = por %p3576_p0, %p3575_p12 }
  0xae   : > { %p3578_p2 = pnand %p3577_p13, %p3571_p11 }
  0xb0   : > { %3581 = shalt.err (!%p3578_p2)
}
  0xb1   : > { %s4628_s17 = sld [smem:[#allocation57_spill]]  ;;  %s2722_s5 = sadd.s32 4294967294, %s3764_s25  }
  0xb2   : > { %s4070_s29 = sadd.s32 1, %s3764_s25   ;;  %s59_s21 = sadd.s32 1, %s3760_s24 }
  0xb3   : > { %4629 = sst [smem:[#allocation40_spill]] %s4070_s29  ;;  %s56_s11 = ssub.s32 %s3764_s25, %s4070_s29 }
  0xb4   : > { %p57_p7 = scmp.eq.s32.totalorder %s56_s11, 0  ;;  %p66_p1 = scmp.ne.s32.totalorder %s3760_s24, %s3756_s30 }
  0xb5   : > { %p67_p5 = scmp.eq.s32.totalorder %s3764_s25, 0  ;;  %p72_p4 = scmp.ne.s32.totalorder %s3756_s30, %s3752_s4 }
  0xb6   : > { %s4081_s27 = scalar_select %p57_p7, %s3760_s24, %s59_s21  }
  0xb7   : > { %3119 = dma.hbm_to_vmem [thread:$0]  (!%p3951_p6), %s4628_s17, 16, %s732_s20, [#allocation24]  }
  0xb8   : > { %4630 = sst [smem:[#allocation41_spill]] %s4081_s27  ;;  %p4083_p8 = por %p67_p5, %p66_p1 }
  0xb9   : > { %p4632_p3 = scmp.eq.s32.totalorder %s3935_s26, 0  ;;  %p542_p9 = scmp.eq.s32.totalorder %s3935_s26, 1 }
  0xba   : > { %p548_p10 = scmp.eq.s32.totalorder %s2722_s5, 1  ;;  %p3146_p11 = scmp.lt.s32.totalorder %s3764_s25, 2 }
  0xbb   : > { %p4089_p6 = por %p4632_p3, %p72_p4  ;;  %s754_s6 = sand.u32 1, %s3760_s24  }
  0xbc   : > { %p4096_p12 = por %p542_p9, %p66_p1  ;;  %p4100_p0 = por %p548_p10, %p72_p4 }
  0xbd   : > { %s4633_s22 = scalar_select %p4089_p6, 1, 0 }
  0xbe   : > { %s4634_s20 = scalar_select %p4096_p12, 1, 0 }
  0xbf   : > { %s4635_s0 = scalar_select %p4100_p0, 1, 0 }
  0xc0   : > { %s4104_s1 = sshll.u32 %s754_s6, 2  ;;  %s2738_s7 = sshll.u32 %s3764_s25, 6 }
  0xc1   : > { %s4636_s21 = sld [smem:[#allocation42_spill]]  ;;  %s758_s5 = scalar_lea.vmem [#allocation2], %s4104_s1 }
  0xc2   : > { %s765_s12 = sshll.u32 %s758_s5, 4  ;;  %p4117_p13 = pnand %p3146_p11, %p4083_p8  ;;  %s4113_s12 = int_to_ptr.vmem [resolvable:$true] %s765_s12 }
  0xc3   : > { %s4638_s16 = sld [smem:[#allocation43_spill]]  ;;  %s772_s11 = sand.u32 1, %s3764_s25  }
  0xc4   : > { %s755_s17 = scalar_lea.sflag [#allocation3], %s754_s6  ;;  %p3584_p7 = pneg %p4117_p13 }
  0xc7   : > { %s4110_s9 = scalar_lea.hbm %s4636_s21, %s2738_s7  ;;  %s3587_s24 = scalar_lea.hbm %s4636_s21, 128 }
  0xc8   : > { %s3582_s27 = scalar_lea.hbm %s4110_s9, 64  ;;  %p3588_p4 = scmp.lt.s32.totalorder %s4110_s9, %s4636_s21 }
  0xc9   : > { %s4124_s3 = scalar_lea.hbm %s4638_s16, %s2738_s7  ;;  %p3583_p2 = scmp.ne.s32.totalorder %s4110_s9, %s3582_s27 }
  0xca   : > { %p3589_p8 = scmp.lt.s32.totalorder %s3587_s24, %s3582_s27 }
  0xcb   : > { %p3585_p1 = pnand %p3584_p7, %p3583_p2 }
  0xcc   : > { %p3590_p3 = por %p3589_p8, %p3588_p4 }
  0xcd   : > { %p3586_p5 = pneg %p3585_p1 }
  0xcf   : > { %p3591_p9 = pnand %p3590_p3, %p3586_p5 }
  0xd1   : > { %3594 = shalt.err (!%p3591_p9)
}
  0xd2   : > { %s3595_s15 = scalar_lea.vmem %s4113_s12, 64  ;;  %s3780_s6 = smov [#allocation2]  }
  0xd3   : > { %p3596_p10 = scmp.ne.s32.totalorder %s4113_s12, %s3595_s15  ;;  %s3600_s7 = sshll.u32 %s3780_s6, 4  ;;  %s3601_s7 = int_to_ptr.vmem [resolvable:$false] %s3600_s7 }
  0xd4   : > { %s3602_s28 = scalar_lea.vmem %s3601_s7, 128  ;;  %p3603_p1 = scmp.lt.s32.totalorder %s4113_s12, %s3601_s7 }
  0xd5   : > { %p3598_p11 = pnand %p3596_p10, %p3584_p7  ;;  %p3604_p0 = scmp.lt.s32.totalorder %s3602_s28, %s3595_s15 }
  0xd7   : > { %p3599_p2 = pneg %p3598_p11  ;;  %p3605_p12 = por %p3604_p0, %p3603_p1 }
  0xd9   : > { %p3606_p4 = pnand %p3605_p12, %p3599_p2 }
  0xdb   : > { %3609 = shalt.err (!%p3606_p4)
}
  0xdc   : > { %3123 = dma.hbm_to_vmem [thread:$0]  (!%p4117_p13), %s4110_s9, 64, %s4113_s12, %s755_s17  }
  0xdd   : > { %s776_s24 = scalar_lea.vmem [#allocation5], %s4104_s1  ;;  %s773_s27 = scalar_lea.sflag [#allocation6], %s772_s11 }
  0xde   : > { %s783_s29 = sshll.u32 %s776_s24, 4  ;;  %s3610_s5 = scalar_lea.hbm %s4124_s3, 64  ;;  %s784_s29 = int_to_ptr.vmem [resolvable:$true] %s783_s29 }
  0xdf   : > { %p3611_p0 = scmp.ne.s32.totalorder %s4124_s3, %s3610_s5  ;;  %s3615_s6 = scalar_lea.hbm %s4638_s16, 128 }
  0xe0   : > { %p3616_p8 = scmp.lt.s32.totalorder %s4124_s3, %s4638_s16  ;;  %p3617_p3 = scmp.lt.s32.totalorder %s3615_s6, %s3610_s5 }
  0xe1   : > { %p3613_p12 = pnand %p3611_p0, %p3584_p7 }
  0xe2   : > { %p3618_p9 = por %p3617_p3, %p3616_p8 }
  0xe3   : > { %p3614_p5 = pneg %p3613_p12 }
  0xe5   : > { %p3619_p10 = pnand %p3618_p9, %p3614_p5 }
  0xe7   : > { %3622 = shalt.err (!%p3619_p10)
}
  0xe8   : > { %s3623_s9 = scalar_lea.vmem %s784_s29, 64  ;;  %s3781_s12 = smov [#allocation5]  }
  0xe9   : > { %p3624_p11 = scmp.ne.s32.totalorder %s784_s29, %s3623_s9  ;;  %s3628_s17 = sshll.u32 %s3781_s12, 4  ;;  %s3629_s17 = int_to_ptr.vmem [resolvable:$false] %s3628_s17 }
  0xea   : > { %s3630_s1 = scalar_lea.vmem %s3629_s17, 128  ;;  %p3631_p4 = scmp.lt.s32.totalorder %s784_s29, %s3629_s17 }
  0xeb   : > { %p3626_p2 = pnand %p3624_p11, %p3584_p7  ;;  %p3632_p0 = scmp.lt.s32.totalorder %s3630_s1, %s3623_s9 }
  0xed   : > { %p3627_p1 = pneg %p3626_p2  ;;  %p3633_p12 = por %p3632_p0, %p3631_p4 }
  0xef   : > { %p3634_p6 = pnand %p3633_p12, %p3627_p1 }
  0xf1   : > { %3637 = shalt.err (!%p3634_p6)
}
  0xf2   : > { %3126 = dma.hbm_to_vmem [thread:$0]  (!%p4117_p13), %s4124_s3, 64, %s784_s29, %s773_s27  }
  0xf3   : > { %p4639_p5 = scmp.ne.s32.totalorder %s4614_s2, 0 }
  0xf4   : > { %s4175_s11 = sand.u32 (!%p4639_p5), 1, %s3756_s30   ;;  %p4640_p7 = scmp.ne.s32.totalorder (!%p4639_p5), %s4633_s22, 0 }
  0xf5   : > { %792 = sbr.rel (%p4639_p5) target bundleno = 4421 (0x1145), region = 108  ;;  %s2742_s24 = sshll.u32 (!%p4639_p5), %s4175_s11, 2 }
  0xf6   : > { %s795_s5 = scalar_lea.sflag (!%p4639_p5), [#allocation3], %s4175_s11  ;;  %s4179_s14 = scalar_lea.vmem (!%p4639_p5), [#allocation2], %s2742_s24 }
  0xfa   : > { %3707 = dma.done.wait (%p4640_p7), %s795_s5, 64  }
  0xfb   : > { %3709 = vsyncadd (%p4640_p7), %s795_s5, 4294967232  ;;  %s803_s13 = sand.u32 1, %s3935_s26   ;;  %s4186_s3 = scalar_lea.vmem [#allocation5], %s2742_s24 }
  0xfc   : > { %s804_s2 = scalar_lea.sflag [#allocation6], %s803_s13 }
  0xfd   : > { %3711 = dma.done.wait (%p4640_p7), %s804_s2, 64  }
  0xfe   : > { %3713 = vsyncadd (%p4640_p7), %s804_s2, 4294967232  ;;  %p4641_p6 = scmp.eq.s32.totalorder %s3935_s26, 0 }
 0x100   : > { %3715 = dma.done.wait (%p4641_p6), [#allocation6], 16   ;;  %p4642_p13 = pmov %p4641_p6 }
 0x101   : > { %p4643_p8 = pmov %p4641_p6 }
 0x102   : > { %3717 = vsyncadd (%p4642_p13), [#allocation6], 4294967280 }
 0x103   : > { %3719 = dma.done.wait (%p4643_p8), [#allocation9], 32   ;;  %p4644_p3 = pmov %p4641_p6 }
 0x105   : > { %3721 = vsyncadd (%p4644_p3), [#allocation9], 4294967264  ;;  %p4645_p9 = pmov %p4644_p3 }
 0x106   : > { %p4646_p10 = pmov %p4644_p3 }
 0x107   : > { %3723 = dma.done.wait (%p4645_p9), [#allocation12], 32  }
 0x108   : > { %3725 = vsyncadd (%p4646_p10), [#allocation12], 4294967264  ;;  %p4647_p11 = pmov %p4644_p3 }
 0x109   : > { %p4648_p2 = pmov %p4644_p3 }
 0x10a   : > { %3727 = dma.done.wait (%p4647_p11), [#allocation15], 272  }
 0x10b   : > { %3729 = vsyncadd (%p4648_p2), [#allocation15], 4294967024  ;;  %p4649_p1 = pmov %p4648_p2 }
 0x10d   : > { %3731 = dma.done.wait (%p4649_p1), [#allocation18], 32   ;;  %p4650_p4 = pmov %p4649_p1 }
 0x10e   : > { %p4651_p0 = pmov %p4649_p1 }
 0x10f   : > { %3733 = vsyncadd (%p4650_p4), [#allocation18], 4294967264 }
 0x110   : > { %3735 = dma.done.wait (%p4651_p0), [#allocation21], 272   ;;  %p4652_p12 = pmov %p4651_p0 }
 0x111   : > { %p4653_p5 = pmov %p4651_p0 }
 0x112   : > { %3737 = vsyncadd (%p4652_p12), [#allocation21], 4294967024 }
 0x113   : > { %3739 = dma.done.wait (%p4653_p5), [#allocation24], 16   ;;  %p4654_p7 = pmov %p4651_p0 }
 0x114   : > { %v3782_v0 = vmov 0.0   ;;  %vm3783_vm0 = vmmov 0   ;;  %s4655_s27 = sld [smem:[#allocation44_spill]]  ;;  %vm955_vm1 = vcmask 261120   ;;  %v4234_v3 = vld [vmem:[%s4179_s14] sm:$0xf]  ;;  %v1200_v22 = vlaneseq }
 0x115   : > { %3741 = vsyncadd (%p4654_p7), [#allocation24], 4294967280  ;;  %2871 = vmatprep.subr.bf16.mxu1 %v3782_v0  ;;  %2875 = vmatprep.mubr.msk.bf16.mxu1 %vm3783_vm0, %v3782_v0  ;;  %v2758_v4 = vld [vmem:[#allocation7] ss:$0 sm:$0xff]  ;;  %s3784_s7 = smov 104   ;;  %s3785_s28 = smov 120  }
 0x116   : > { %2885 = vmatprep.subr.bf16.mxu0 %v3782_v0  ;;  %2887 = vmatprep.mubr.msk.bf16.mxu0 %vm3783_vm0, %v3782_v0  ;;  %s3786_s9 = smov 96   ;;  %s3787_s12 = smov 112   ;;  %vm1009_vm2 = vcmask 64512   ;;  %v1201_v23 = vshrl.u32 %v1200_v22, 7  ;;  %v1203_v24 = vand.u32 127, %v1200_v22  ;;  %vm1264_vm4 = vcmask 1043456  }
 0x117   : > { %s3788_s17 = smov 64   ;;  %s4656_s5 = sld [smem:[#allocation46_spill]]  ;;  %vm1468_vm5 = vcmask 130048   ;;  %vm1471_vm6 = vcmask 195584   ;;  %vm2375_vm7 = vcmask 523264  }
 0x118   : > { %vm1204_vm3 = vcmp.le.s32.totalorder %v1203_v24, %v1201_v23  ;;  %s3789_s2 = smov 8   ;;  %s3790_s22 = smov 16  }
 0x119   : > { %s3791_s29 = smov 24   ;;  %s2812_s14 = sshll.u32 %s3935_s26, 7 }
 0x11a   : > { %v3216_v1 = vld [vmem:[%s4655_s27 + $0x8] sm:$0xff]   ;;  %v3217_v2 = vld [vmem:[%s4655_s27] sm:$0xff]   ;;  %p4657_p13 = scmp.ne.s32.totalorder %s4634_s20, 0 }
 0x11b   : > { %2872 = vmatpush3.bf16.msra.mxu1 %v3216_v1 }
 0x11c   : > { %2873 = vmatprep.subr.bf16.mxu1 %v3782_v0 }
 0x11f   : > { %2874 = vmatpush3.bf16.msra.mxu1 %v3217_v2 }
 0x120   : > { %2879 = vmatprep.subr.bf16.mxu1 %v3782_v0 }
 0x122   : > { %2876 = vmatmul.mubr.msk.bf16.vlgmr.msra.gmra.mxu1 %vm955_vm1, %v4234_v3 }
 0x123   : > { %2881 = vmatprep.mubr.msk.bf16.mxu1 %vm3783_vm0, %v3782_v0 }
 0x1e2   : > { %v993_v5 = vpop.f32.mrf.mxu1 }
 0x1e3   : > { %v994_v6 = vadd.f32 %v2758_v4, %v993_v5 }
 0x1e4   : > { %v2877_v7 = vpop.f32.mrf.mxu1 }
 0x1e5   : > { %v4241_v8 = vpack.c.bf16 %v994_v6, %v994_v6 }
 0x1e6   : > { %v996_v9 = vpop.f32.mrf.mxu1 }
 0x1e7   : > { %1005 = vrot.lane.b32.xlu1 %v4241_v8, %s3784_s7  ;;  %1001 = vrot.lane.b32.xlu0 %v4241_v8, %s3785_s28 }
 0x1e8   : > { %v2878_v10 = vpop.f32.mrf.mxu1 }
 0x1eb   : > { %1007 = vrot.lane.b32.xlu1 %v4241_v8, %s3786_s9  ;;  %1003 = vrot.lane.b32.xlu0 %v4241_v8, %s3787_s12 }
 0x259   : > { %v4251_v11 = vpop.permute.xlu1 %1005  ;;  %v1002_v12 = vpop.permute.xlu0 %1001 }
 0x25a   : > { %1056 = vrot.lane.b32.xlu0 %v1002_v12, %s3786_s9 }
 0x25d   : > { %v1008_v13 = vpop.permute.xlu1 %1007  ;;  %v4254_v14 = vpop.permute.xlu0 %1003 }
 0x25e   : > { %v1014_v15 = vsel %vm1009_vm2, %v1008_v13, 0  ;;  %1152 = vrot.lane.b32.xlu0 %v4251_v11, %s3786_s9  ;;  %1104 = vrot.lane.b32.xlu1 %v4254_v14, %s3786_s9 }
 0x25f   : > { %2880 = vmatpush3.bf16.xpose.msra.mxu1 %v1014_v15 }
 0x260   : > { %2891 = vmatprep.subr.bf16.mxu1 %v3782_v0 }
 0x266   : > { %2882 = vmatmul.mubr.msk.bf16.vlgmr.msra.gmra.mxu1 %vm1009_vm2, %v4241_v8 }
 0x267   : > { %2893 = vmatprep.mubr.msk.bf16.mxu1 %vm3783_vm0, %v3782_v0 }
 0x2cc   : > { %v1057_v16 = vpop.permute.xlu0 %1056 }
 0x2cd   : > { %v1062_v17 = vsel %vm1009_vm2, %v1057_v16, 0 }
 0x2ce   : > { %2886 = vmatpush3.bf16.xpose.msra.mxu0 %v1062_v17 }
 0x2cf   : > { %2897 = vmatprep.subr.bf16.mxu0 %v3782_v0 }
 0x2d0   : > { %v1105_v18 = vpop.permute.xlu1 %1104  ;;  %v1153_v20 = vpop.permute.xlu0 %1152 }
 0x2d1   : > { %v1110_v19 = vsel %vm1009_vm2, %v1105_v18, 0  ;;  %v1158_v21 = vsel %vm1009_vm2, %v1153_v20, 0 }
 0x2d2   : > { %2892 = vmatpush3.bf16.xpose.msra.mxu1 %v1110_v19 }
 0x2d3   : > { %2903 = vmatprep.subr.bf16.mxu1 %v3782_v0 }
 0x2d5   : > { %2888 = vmatmul.mubr.msk.bf16.vlgmr.msra.gmra.mxu0 %vm1009_vm2, %v1002_v12 }
 0x2d6   : > { %2898 = vmatpush3.bf16.xpose.msra.mxu0 %v1158_v21  ;;  %2899 = vmatprep.mubr.msk.bf16.mxu0 %vm3783_vm0, %v3782_v0 }
 0x2d7   : > { %2909 = vmatprep.subr.bf16.mxu0 %v3782_v0 }
 0x2d9   : > { %2894 = vmatmul.mubr.msk.bf16.vlgmr.msra.gmra.mxu1 %vm1009_vm2, %v4254_v14 }
 0x2da   : > { %2905 = vmatprep.mubr.msk.bf16.mxu1 %vm3783_vm0, %v3782_v0 }
 0x2dd   : > { %2900 = vmatmul.mubr.msk.bf16.vlgmr.msra.gmra.mxu0 %vm1009_vm2, %v4251_v11 }
 0x2de   : > { %2911 = vmatprep.mubr.msk.bf16.mxu0 %vm3783_vm0, %v3782_v0 }
 0x326   : > { %v1050_v25 = vpop.f32.mrf.mxu1 }
 0x327   : > { %v1207_v26 = vsel %vm1204_vm3, %v1050_v25, -1e+09 }
 0x328   : > { %v2883_v27 = vpop.f32.mrf.mxu1  ;;  %v1211_v28 = vsel %vm1009_vm2, %v1207_v26, -inf }
 0x329   : > { %1212 = vmax.xlane.f32.xlu1 %v1211_v28 }
 0x32a   : > { %v1053_v29 = vpop.f32.mrf.mxu1 }
 0x32c   : > { %v2884_v30 = vpop.f32.mrf.mxu1 }
 0x395   : > { %v1098_v31 = vpop.f32.mrf.mxu0 }
 0x396   : > { %v1208_v32 = vsel %vm1204_vm3, %v1098_v31, -1e+09 }
 0x397   : > { %v2889_v33 = vpop.f32.mrf.mxu0  ;;  %v1214_v34 = vsel %vm1009_vm2, %v1208_v32, -inf }
 0x398   : > { %1215 = vmax.xlane.f32.xlu0 %v1214_v34 }
 0x399   : > { %v1101_v35 = vpop.f32.mrf.mxu0  ;;  %v1146_v36 = vpop.f32.mrf.mxu1 }
 0x39a   : > { %v1209_v37 = vsel %vm1204_vm3, %v1146_v36, -1e+09  ;;  %v3218_v35 = vld [vmem:[%s4656_s5 + $0x8] sm:$0xff]   ;;  %v3219_v36 = vld [vmem:[%s4656_s5] sm:$0xff]  }
 0x39b   : > { %v2890_v38 = vpop.f32.mrf.mxu0  ;;  %v2895_v39 = vpop.f32.mrf.mxu1  ;;  %v1217_v40 = vsel %vm1009_vm2, %v1209_v37, -inf }
 0x39c   : > { %1218 = vmax.xlane.f32.xlu0 %v1217_v40 }
 0x39d   : > { %v1149_v41 = vpop.f32.mrf.mxu1  ;;  %v1194_v42 = vpop.f32.mrf.mxu0 }
 0x39e   : > { %v1210_v43 = vsel %vm1204_vm3, %v1194_v42, -1e+09 }
 0x39f   : > { %v2896_v44 = vpop.f32.mrf.mxu1  ;;  %v2901_v45 = vpop.f32.mrf.mxu0  ;;  %v1220_v46 = vsel %vm1009_vm2, %v1210_v43, -inf }
 0x3a0   : > { %1221 = vmax.xlane.f32.xlu1 %v1220_v46 }
 0x3a1   : > { %v1197_v47 = vpop.f32.mrf.mxu0 }
 0x3a3   : > { %v2902_v48 = vpop.f32.mrf.mxu0 }
 0x3b1   : > { %1308 = vrot.lane.b32.xlu1 %v1002_v12, %s3788_s17 }
 0x3b2   : > { %1259 = vrot.lane.b32.xlu0 %v4241_v8, %s3788_s17  ;;  %v1213_v49 = vpop.xlane.xlu1 %1212 }
 0x3b3   : > { %v1223_v50 = vsub.f32 %v1207_v26, %v1213_v49 }
 0x3b5   : > { %v1227_v51 = vmul.f32 1.442695, %v1223_v50 }
 0x3b7   : > { %3232 = vpow2.f32 %v1227_v51 }
 0x3c4   : > { %v3233_v52 = vpop.eup %3232 }
 0x3c5   : > { %v1235_v53 = vsel %vm1009_vm2, %v3233_v52, 0.0 }
 0x3d1   : > { %1236 = vadd.xlane.f32.xlu0 %v1235_v53 }
 0x421   : > { %v1216_v54 = vpop.xlane.xlu0 %1215 }
 0x422   : > { %v1224_v55 = vsub.f32 %v1208_v32, %v1216_v54 }
 0x424   : > { %v1229_v56 = vmul.f32 1.442695, %v1224_v55 }
 0x425   : > { %v1219_v57 = vpop.xlane.xlu0 %1218 }
 0x426   : > { %3234 = vpow2.f32 %v1229_v56  ;;  %v1225_v58 = vsub.f32 %v1209_v37, %v1219_v57 }
 0x428   : > { %v1231_v59 = vmul.f32 1.442695, %v1225_v58 }
 0x429   : > { %v1222_v60 = vpop.xlane.xlu1 %1221  ;;  %v1260_v61 = vpop.permute.xlu0 %1259 }
 0x42a   : > { %3236 = vpow2.f32 %v1231_v59  ;;  %v1226_v62 = vsub.f32 %v1210_v43, %v1222_v60  ;;  %v1266_v63 = vsel %vm1264_vm4, %v1260_v61, 0  ;;  %v2770_v59 = vld [vmem:[#allocation8] ss:$0 sm:$0xff]  ;;  %v931_v60 = vunpack.c.l.bf16 %v4234_v3  ;;  %v3220_v3 = vld [vmem:[%s4568_s10 + $0x8] sm:$0xff]  }
 0x42b   : > { %2904 = vmatpush3.bf16.msra.mxu1 %v1266_v63 }
 0x42c   : > { %v1233_v1 = vmul.f32 1.442695, %v1226_v62  ;;  %2915 = vmatprep.subr.bf16.mxu1 %v3782_v0 }
 0x42d   : > { %v1309_v2 = vpop.permute.xlu1 %1308 }
 0x42e   : > { %3238 = vpow2.f32 %v1233_v1  ;;  %v1314_v4 = vsel %vm1264_vm4, %v1309_v2, 0 }
 0x42f   : > { %2910 = vmatpush3.bf16.msra.mxu0 %v1314_v4 }
 0x430   : > { %2921 = vmatprep.subr.bf16.mxu0 %v3782_v0 }
 0x433   : > { %v3235_v5 = vpop.eup %3234 }
 0x434   : > { %v1238_v6 = vsel %vm1009_vm2, %v3235_v5, 0.0 }
 0x435   : > { %1239 = vadd.xlane.f32.xlu1 %v1238_v6 }
 0x437   : > { %v3237_v7 = vpop.eup %3236 }
 0x438   : > { %v1241_v8 = vsel %vm1009_vm2, %v3237_v7, 0.0 }
 0x439   : > { %1242 = vadd.xlane.f32.xlu0 %v1241_v8 }
 0x43b   : > { %v3239_v9 = vpop.eup %3238 }
 0x43c   : > { %v1244_v10 = vsel %vm1009_vm2, %v3239_v9, 0.0 }
 0x43d   : > { %1245 = vadd.xlane.f32.xlu1 %v1244_v10 }
 0x44e   : > { %1356 = vrot.lane.b32.xlu1 %v4254_v14, %s3788_s17 }
 0x44f   : > { %1404 = vrot.lane.b32.xlu0 %v4251_v11, %s3788_s17 }
 0x45a   : > { %v1237_v12 = vpop.xlane.xlu0 %1236 }
 0x45b   : > { %3240 = vrcp.f32 %v1237_v12  ;;  %v3221_v12 = vld [vmem:[%s4568_s10] sm:$0xff]  }
 0x468   : > { %v3241_v13 = vpop.eup %3240 }
 0x469   : > { %v1251_v15 = vmul.f32 %v3241_v13, %v3233_v52  ;;  %v930_v13 = vld [vmem:[%s4186_s3] sm:$0xf]  ;;  %s2756_s3 = sshll.u32 %s4175_s11, 3 }
 0x46b   : > { %v1255_v16 = vpack.c.bf16 %v1251_v15, %v1251_v15  ;;  %v3222_v15 = vld [vmem:[%s4566_s8 + $0x8] sm:$0xff]  }
 0x46d   : > { %2906 = vmatmul.mubr.msk.bf16.vlgmr.msra.gmra.mxu1 %vm1009_vm2, %v1255_v16  ;;  %v3223_v16 = vld [vmem:[%s4566_s8] sm:$0xff]  }
 0x46e   : > { %2917 = vmatprep.mubr.msk.bf16.mxu1 %vm3783_vm0, %v3782_v0 }
 0x4be   : > { %v1240_v17 = vpop.xlane.xlu1 %1239 }
 0x4bf   : > { %3242 = vrcp.f32 %v1240_v17 }
 0x4c2   : > { %v1243_v18 = vpop.xlane.xlu0 %1242 }
 0x4c3   : > { %3244 = vrcp.f32 %v1243_v18 }
 0x4c6   : > { %v1246_v19 = vpop.xlane.xlu1 %1245  ;;  %v1405_v22 = vpop.permute.xlu0 %1404 }
 0x4c7   : > { %3246 = vrcp.f32 %v1246_v19  ;;  %v1410_v25 = vsel %vm1264_vm4, %v1405_v22, 0 }
 0x4ca   : > { %v1357_v14 = vpop.permute.xlu1 %1356 }
 0x4cb   : > { %v1362_v20 = vsel %vm1264_vm4, %v1357_v14, 0 }
 0x4cc   : > { %v3243_v11 = vpop.eup %3242  ;;  %2916 = vmatpush3.bf16.msra.mxu1 %v1362_v20  ;;  %v2774_v20 = vld [vmem:[#allocation10] ss:$0 sm:$0xff] }
 0x4cd   : > { %v1252_v21 = vmul.f32 %v3243_v11, %v3235_v5  ;;  %2927 = vmatprep.subr.bf16.mxu1 %v3782_v0 }
 0x4cf   : > { %v1256_v23 = vpack.c.bf16 %v1252_v21, %v1252_v21  ;;  %v2775_v21 = vld [vmem:[#allocation11] ss:$0 sm:$0xff] }
 0x4d0   : > { %v3245_v24 = vpop.eup %3244 }
 0x4d1   : > { %2912 = vmatmul.mubr.msk.bf16.vlgmr.msra.gmra.mxu0 %vm1009_vm2, %v1256_v23  ;;  %v1253_v26 = vmul.f32 %v3245_v24, %v3237_v7 }
 0x4d2   : > { %2922 = vmatpush3.bf16.msra.mxu0 %v1410_v25  ;;  %2923 = vmatprep.mubr.msk.bf16.mxu0 %vm3783_vm0, %v3782_v0  ;;  %v2780_v25 = vld [vmem:[#allocation14] ss:$0 sm:$0xff] }
 0x4d3   : > { %v1257_v27 = vpack.c.bf16 %v1253_v26, %v1253_v26  ;;  %2935 = vmatprep.subr.bf16.mxu0 %v3782_v0 }
 0x4d4   : > { %v3247_v28 = vpop.eup %3246 }
 0x4d5   : > { %2918 = vmatmul.mubr.msk.bf16.vlgmr.msra.gmra.mxu1 %vm1009_vm2, %v1257_v27  ;;  %v1254_v29 = vmul.f32 %v3247_v28, %v3239_v9 }
 0x4d6   : > { %2931 = vmatprep.mubr.msk.bf16.mxu1 %vm3783_vm0, %v3782_v0  ;;  %2928 = vmatpush3.bf16.msra.mxu1 %v3218_v35  ;;  %v2776_v35 = vld [vmem:[#allocation13] ss:$0 sm:$0xff] }
 0x4d7   : > { %v1258_v30 = vpack.c.bf16 %v1254_v29, %v1254_v29  ;;  %2929 = vmatprep.subr.bf16.mxu1 %v3782_v0 }
 0x4d9   : > { %2924 = vmatmul.mubr.msk.bf16.vlgmr.msra.gmra.mxu0 %vm1009_vm2, %v1258_v30 }
 0x4da   : > { %2939 = vmatprep.mubr.msk.bf16.mxu0 %vm3783_vm0, %v3782_v0  ;;  %2930 = vmatpush3.bf16.msra.mxu1 %v3219_v36 }
 0x4db   : > { %2943 = vmatprep.subr.bf16.mxu1 %v3782_v0  ;;  %2936 = vmatpush3.bf16.msra.mxu0 %v3222_v15 }
 0x4dc   : > { %2937 = vmatprep.subr.bf16.mxu0 %v3782_v0 }
 0x4df   : > { %2938 = vmatpush3.bf16.msra.mxu0 %v3223_v16 }
 0x4e0   : > { %2951 = vmatprep.subr.bf16.mxu0 %v3782_v0 }
 0x52d   : > { %v1302_v31 = vpop.f32.mrf.mxu1 }
 0x52e   : > { %v1452_v53 = vpack.c.bf16 %v1302_v31, %v1302_v31 }
 0x52f   : > { %v2907_v32 = vpop.f32.mrf.mxu1 }
 0x531   : > { %v1305_v33 = vpop.f32.mrf.mxu1 }
 0x533   : > { %v2908_v34 = vpop.f32.mrf.mxu1 }
 0x591   : > { %v1350_v37 = vpop.f32.mrf.mxu0 }
 0x592   : > { %v1453_v38 = vpack.c.bf16 %v1350_v37, %v1350_v37 }
 0x593   : > { %v2913_v39 = vpop.f32.mrf.mxu0 }
 0x594   : > { %1457 = vrot.lane.b32.xlu1 %v1453_v38, %s3789_s2 }
 0x595   : > { %v1353_v40 = vpop.f32.mrf.mxu0  ;;  %v1398_v41 = vpop.f32.mrf.mxu1 }
 0x596   : > { %v1454_v42 = vpack.c.bf16 %v1398_v41, %v1398_v41 }
 0x597   : > { %v2914_v43 = vpop.f32.mrf.mxu0  ;;  %v2919_v44 = vpop.f32.mrf.mxu1 }
 0x598   : > { %1460 = vrot.lane.b32.xlu0 %v1454_v42, %s3790_s22 }
 0x599   : > { %v1401_v45 = vpop.f32.mrf.mxu1  ;;  %v1446_v46 = vpop.f32.mrf.mxu0 }
 0x59a   : > { %v1455_v47 = vpack.c.bf16 %v1446_v46, %v1446_v46 }
 0x59b   : > { %v2920_v48 = vpop.f32.mrf.mxu1  ;;  %v2925_v49 = vpop.f32.mrf.mxu0 }
 0x59c   : > { %1463 = vrot.lane.b32.xlu1 %v1455_v47, %s3791_s29 }
 0x59d   : > { %v1449_v50 = vpop.f32.mrf.mxu0 }
 0x59f   : > { %v2926_v51 = vpop.f32.mrf.mxu0 }
 0x606   : > { %v1458_v52 = vpop.permute.xlu1 %1457 }
 0x607   : > { %v1467_v55 = vsel %vm1009_vm2, %v1452_v53, %v1458_v52 }
 0x60a   : > { %v1461_v54 = vpop.permute.xlu0 %1460 }
 0x60b   : > { %v1470_v56 = vsel %vm1468_vm5, %v1467_v55, %v1461_v54 }
 0x60e   : > { %v1464_v57 = vpop.permute.xlu1 %1463 }
 0x60f   : > { %v1473_v58 = vsel %vm1471_vm6, %v1470_v56, %v1464_v57 }
 0x610   : > { %2932 = vmatmul.mubr.msk.bf16.vlgmr.msra.gmra.mxu1 %vm955_vm1, %v1473_v58 }
 0x611   : > { %2947 = vmatprep.mubr.msk.bf16.mxu1 %vm3783_vm0, %v3782_v0  ;;  %2944 = vmatpush3.bf16.msra.mxu1 %v3220_v3 }
 0x612   : > { %2945 = vmatprep.subr.bf16.mxu1 %v3782_v0 }
 0x615   : > { %2946 = vmatpush3.bf16.msra.mxu1 %v3221_v12 }
 0x616   : > { %2957 = vmatprep.subr.bf16.mxu1 %v3782_v0 }
 0x618   : > { %2948 = vmatmul.mubr.msk.bf16.vlgmr.msra.gmra.mxu1 %vm955_vm1, %v930_v13 }
 0x619   : > { %2959 = vmatprep.mubr.msk.bf16.mxu1 %vm3783_vm0, %v3782_v0 }
 0x6d0   : > { %v1533_v61 = vpop.f32.mrf.mxu1 }
 0x6d1   : > { %v1534_v62 = vadd.f32 %v2770_v59, %v1533_v61 }
 0x6d2   : > { %v2933_v63 = vpop.f32.mrf.mxu1 }
 0x6d3   : > { %v1539_v1 = vadd.f32 %v1534_v62, %v931_v60 }
 0x6d4   : > { %v1536_v2 = vpop.f32.mrf.mxu1 }
 0x6d5   : > { %v1540_v4 = vsel %vm955_vm1, %v1539_v1, 0.0 }
 0x6d6   : > { %v2934_v5 = vpop.f32.mrf.mxu1  ;;  %1541 = vadd.xlane.f32.xlu0 %v1540_v4 }
 0x6d8   : > { %v1698_v26 = vpop.f32.mrf.mxu1 }
 0x6d9   : > { %v1699_v27 = vadd.f32 %v2780_v25, %v1698_v26 }
 0x6da   : > { %v2949_v28 = vpop.f32.mrf.mxu1 }
 0x6db   : > { %v4369_v29 = vpack.c.bf16 %v1699_v27, %v1699_v27 }
 0x6dc   : > { %v1701_v30 = vpop.f32.mrf.mxu1 }
 0x6dd   : > { %v1723_v31 = vsel %vm1009_vm2, %v4369_v29, 0 }
 0x6de   : > { %v2950_v32 = vpop.f32.mrf.mxu1 }
 0x6ec   : > { %1713 = vrot.lane.b32.xlu0 %v4369_v29, %s3785_s28 }
 0x75f   : > { %v1542_v6 = vpop.xlane.xlu0 %1541 }
 0x760   : > { %v1544_v7 = vmul.f32 0.03125, %v1542_v6 }
 0x762   : > { %v1545_v8 = vsub.f32 %v1539_v1, %v1544_v7 }
 0x763   : > { %v4380_v33 = vpop.permute.xlu0 %1713 }
 0x764   : > { %v1546_v9 = vmul.f32 %v1545_v8, %v1545_v8  ;;  %v1769_v34 = vsel %vm1009_vm2, %v4380_v33, 0 }
 0x765   : > { %2958 = vmatpush3.bf16.xpose.msra.mxu1 %v1769_v34 }
 0x766   : > { %v1547_v10 = vsel %vm955_vm1, %v1546_v9, 0.0  ;;  %2969 = vmatprep.subr.bf16.mxu1 %v3782_v0 }
 0x767   : > { %1548 = vadd.xlane.f32.xlu1 %v1547_v10 }
 0x778   : > { %1715 = vrot.lane.b32.xlu1 %v4369_v29, %s3787_s12 }
 0x77c   : > { %1717 = vrot.lane.b32.xlu1 %v4369_v29, %s3784_s7 }
 0x7f0   : > { %v1549_v17 = vpop.xlane.xlu1 %1548 }
 0x7f1   : > { %v1550_v18 = vmul.f32 0.03125, %v1549_v17 }
 0x7f3   : > { %v1551_v19 = vadd.f32 1e-05, %v1550_v18 }
 0x7f4   : > { %v4385_v40 = vpop.permute.xlu1 %1715 }
 0x7f5   : > { %3248 = vrsqrt.f32 %v1551_v19  ;;  %v1815_v42 = vsel %vm1009_vm2, %v4385_v40, 0 }
 0x7f8   : > { %v4396_v44 = vpop.permute.xlu1 %1717 }
 0x7f9   : > { %v1861_v46 = vsel %vm1009_vm2, %v4396_v44, 0 }
 0x802   : > { %v3249_v14 = vpop.eup %3248 }
 0x803   : > { %v1553_v11 = vmul.f32 %v3249_v14, %v1545_v8 }
 0x805   : > { %v1561_v22 = vmul.f32 %v2774_v20, %v1553_v11 }
 0x807   : > { %v4362_v23 = vadd.f32 %v2775_v21, %v1561_v22 }
 0x809   : > { %v1570_v24 = vpack.c.bf16 %v4362_v23, %v4362_v23 }
 0x80b   : > { %2940 = vmatmul.mubr.msk.bf16.vlgmr.msra.gmra.mxu0 %vm955_vm1, %v1570_v24 }
 0x80c   : > { %2953 = vmatprep.mubr.msk.bf16.mxu0 %vm3783_vm0, %v3782_v0  ;;  %2952 = vmatpush3.bf16.xpose.msra.mxu0 %v1723_v31 }
 0x80d   : > { %2963 = vmatprep.subr.bf16.mxu0 %v3782_v0 }
 0x8cb   : > { %v1631_v36 = vpop.f32.mrf.mxu0 }
 0x8cc   : > { %v1632_v37 = vadd.f32 %v2776_v35, %v1631_v36 }
 0x8cd   : > { %v2941_v38 = vpop.f32.mrf.mxu0 }
 0x8ce   : > { %v1637_v39 = vpack.c.bf16 %v1632_v37, %v1632_v37 }
 0x8cf   : > { %v1634_v41 = vpop.f32.mrf.mxu0 }
 0x8d0   : > { %1710 = vrot.lane.b32.xlu1 %v1637_v39, %s3784_s7  ;;  %1706 = vrot.lane.b32.xlu0 %v1637_v39, %s3785_s28  ;;  %s4453_s7 = scalar_lea.vmem [#allocation26], %s2756_s3  ;;  %s2481_s28 = scalar_lea.hbm %s4581_s23, %s2812_s14 }
 0x8d1   : > { %2954 = vmatmul.mubr.msk.bf16.vlgmr.msra.gmra.mxu0 %vm1009_vm2, %v1637_v39  ;;  %v2942_v43 = vpop.f32.mrf.mxu0 }
 0x8d2   : > { %2964 = vmatpush3.bf16.xpose.msra.mxu0 %v1815_v42  ;;  %2965 = vmatprep.mubr.msk.bf16.mxu0 %vm3783_vm0, %v3782_v0 }
 0x8d3   : > { %2975 = vmatprep.subr.bf16.mxu0 %v3782_v0 }
 0x8d4   : > { %1708 = vrot.lane.b32.xlu0 %v1637_v39, %s3787_s12  ;;  %s2457_s12 = scalar_lea.sflag [#allocation27], %s4175_s11 }
 0x942   : > { %v1707_v45 = vpop.permute.xlu0 %1706  ;;  %v1711_v48 = vpop.permute.xlu1 %1710 }
 0x943   : > { %2960 = vmatmul.mubr.msk.bf16.vlgmr.msra.gmra.mxu1 %vm1009_vm2, %v1707_v45 }
 0x944   : > { %2970 = vmatpush3.bf16.xpose.msra.mxu1 %v1861_v46  ;;  %2971 = vmatprep.mubr.msk.bf16.mxu1 %vm3783_vm0, %v3782_v0 }
 0x945   : > { %2981 = vmatprep.subr.bf16.mxu1 %v3782_v0 }
 0x946   : > { %v1709_v47 = vpop.permute.xlu0 %1708 }
 0x947   : > { %2966 = vmatmul.mubr.msk.bf16.vlgmr.msra.gmra.mxu0 %vm1009_vm2, %v1709_v47 }
 0x948   : > { %2977 = vmatprep.mubr.msk.bf16.mxu0 %vm3783_vm0, %v3782_v0 }
 0x94b   : > { %2972 = vmatmul.mubr.msk.bf16.vlgmr.msra.gmra.mxu1 %vm1009_vm2, %v1711_v48 }
 0x94c   : > { %2983 = vmatprep.mubr.msk.bf16.mxu1 %vm3783_vm0, %v3782_v0 }
 0x991   : > { %v1759_v49 = vpop.f32.mrf.mxu0 }
 0x992   : > { %v1903_v50 = vsel %vm1009_vm2, %v1759_v49, -inf }
 0x993   : > { %1904 = vmax.xlane.f32.xlu0 %v1903_v50  ;;  %v2955_v51 = vpop.f32.mrf.mxu0 }
 0x995   : > { %v1762_v52 = vpop.f32.mrf.mxu0 }
 0x997   : > { %v2956_v53 = vpop.f32.mrf.mxu0 }
 0xa03   : > { %v1805_v54 = vpop.f32.mrf.mxu1 }
 0xa04   : > { %v1906_v55 = vsel %vm1009_vm2, %v1805_v54, -inf }
 0xa05   : > { %1907 = vmax.xlane.f32.xlu1 %v1906_v55  ;;  %v2961_v56 = vpop.f32.mrf.mxu1 }
 0xa07   : > { %v1808_v57 = vpop.f32.mrf.mxu1  ;;  %v1851_v58 = vpop.f32.mrf.mxu0 }
 0xa08   : > { %v1909_v59 = vsel %vm1009_vm2, %v1851_v58, -inf }
 0xa09   : > { %v2962_v60 = vpop.f32.mrf.mxu1  ;;  %1910 = vmax.xlane.f32.xlu0 %v1909_v59  ;;  %v2967_v61 = vpop.f32.mrf.mxu0 }
 0xa0b   : > { %v1854_v62 = vpop.f32.mrf.mxu0  ;;  %v1897_v63 = vpop.f32.mrf.mxu1 }
 0xa0c   : > { %v1912_v1 = vsel %vm1009_vm2, %v1897_v63, -inf }
 0xa0d   : > { %v2973_v2 = vpop.f32.mrf.mxu1  ;;  %1913 = vmax.xlane.f32.xlu0 %v1912_v1  ;;  %v2968_v4 = vpop.f32.mrf.mxu0  ;;  %v3225_v1 = vld [vmem:[#allocation16] sm:$0xff]  }
 0xa0f   : > { %v1900_v5 = vpop.f32.mrf.mxu1 }
 0xa11   : > { %v2974_v6 = vpop.f32.mrf.mxu1 }
 0xa16   : > { %1951 = vrot.lane.b32.xlu1 %v4369_v29, %s3786_s9 }
 0xa1c   : > { %v1905_v7 = vpop.xlane.xlu0 %1904 }
 0xa1d   : > { %v1915_v8 = vsub.f32 %v1759_v49, %v1905_v7 }
 0xa1f   : > { %v1919_v9 = vmul.f32 1.442695, %v1915_v8 }
 0xa21   : > { %3250 = vpow2.f32 %v1919_v9 }
 0xa2e   : > { %v3251_v10 = vpop.eup %3250 }
 0xa2f   : > { %v1927_v3 = vsel %vm1009_vm2, %v3251_v10, 0.0 }
 0xa3a   : > { %1928 = vadd.xlane.f32.xlu1 %v1927_v3 }
 0xa8e   : > { %v1908_v12 = vpop.xlane.xlu1 %1907 }
 0xa8f   : > { %v1916_v13 = vsub.f32 %v1805_v54, %v1908_v12 }
 0xa91   : > { %v1921_v15 = vmul.f32 1.442695, %v1916_v13 }
 0xa92   : > { %v1952_v16 = vpop.permute.xlu1 %1951  ;;  %v1911_v17 = vpop.xlane.xlu0 %1910 }
 0xa93   : > { %3252 = vpow2.f32 %v1921_v15  ;;  %v1957_v18 = vsel %vm1264_vm4, %v1952_v16, 0  ;;  %v1917_v19 = vsub.f32 %v1851_v58, %v1911_v17 }
 0xa94   : > { %2976 = vmatpush3.bf16.msra.mxu0 %v1957_v18 }
 0xa95   : > { %v1923_v14 = vmul.f32 1.442695, %v1917_v19  ;;  %2987 = vmatprep.subr.bf16.mxu0 %v3782_v0 }
 0xa96   : > { %v1914_v20 = vpop.xlane.xlu0 %1913 }
 0xa97   : > { %3254 = vpow2.f32 %v1923_v14  ;;  %v1918_v11 = vsub.f32 %v1897_v63, %v1914_v20  ;;  %v3224_v63 = vld [vmem:[#allocation16 + $0x8] sm:$0xff]  }
 0xa99   : > { %v1925_v21 = vmul.f32 1.442695, %v1918_v11 }
 0xa9b   : > { %3256 = vpow2.f32 %v1925_v21 }
 0xaa0   : > { %v3253_v22 = vpop.eup %3252 }
 0xaa1   : > { %v1930_v24 = vsel %vm1009_vm2, %v3253_v22, 0.0 }
 0xaa2   : > { %1931 = vadd.xlane.f32.xlu0 %v1930_v24 }
 0xaa4   : > { %v3255_v25 = vpop.eup %3254 }
 0xaa5   : > { %v1933_v26 = vsel %vm1009_vm2, %v3255_v25, 0.0 }
 0xaa6   : > { %1934 = vadd.xlane.f32.xlu1 %v1933_v26 }
 0xaa8   : > { %v3257_v27 = vpop.eup %3256 }
 0xaa9   : > { %v1936_v28 = vsel %vm1009_vm2, %v3257_v27, 0.0 }
 0xaaa   : > { %1937 = vadd.xlane.f32.xlu0 %v1936_v28 }
 0xab7   : > { %2047 = vrot.lane.b32.xlu1 %v4385_v40, %s3786_s9 }
 0xabb   : > { %2095 = vrot.lane.b32.xlu1 %v4396_v44, %s3786_s9 }
 0xac0   : > { %1999 = vrot.lane.b32.xlu0 %v4380_v33, %s3786_s9  ;;  %s2483_s9 = sshll.u32 %s4453_s7, 4  ;;  %s2484_s9 = int_to_ptr.vmem [resolvable:$true] %s2483_s9 }
 0xac3   : > { %v1929_v29 = vpop.xlane.xlu1 %1928 }
 0xac4   : > { %3258 = vrcp.f32 %v1929_v29 }
 0xad1   : > { %v3259_v30 = vpop.eup %3258 }
 0xad2   : > { %v1940_v31 = vmul.f32 %v3259_v30, %v3251_v10 }
 0xad4   : > { %v1947_v32 = vpack.c.bf16 %v1940_v31, %v1940_v31  ;;  %v2228_v48 = vsel %vm1009_vm2, %v1940_v31, 0.0 }
 0xad6   : > { %2978 = vmatmul.mubr.msk.bf16.vlgmr.msra.gmra.mxu0 %vm1009_vm2, %v1947_v32 }
 0xad7   : > { %2989 = vmatprep.mubr.msk.bf16.mxu0 %vm3783_vm0, %v3782_v0 }
 0xb2b   : > { %v1932_v34 = vpop.xlane.xlu0 %1931 }
 0xb2c   : > { %3260 = vrcp.f32 %v1932_v34 }
 0xb2f   : > { %v1935_v35 = vpop.xlane.xlu1 %1934 }
 0xb30   : > { %3262 = vrcp.f32 %v1935_v35 }
 0xb33   : > { %v2048_v36 = vpop.permute.xlu1 %2047  ;;  %v1938_v37 = vpop.xlane.xlu0 %1937 }
 0xb34   : > { %v2053_v38 = vsel %vm1264_vm4, %v2048_v36, 0  ;;  %3264 = vrcp.f32 %v1938_v37 }
 0xb35   : > { %2988 = vmatpush3.bf16.msra.mxu0 %v2053_v38 }
 0xb36   : > { %2999 = vmatprep.subr.bf16.mxu0 %v3782_v0 }
 0xb37   : > { %v2000_v33 = vpop.permute.xlu0 %1999  ;;  %v2096_v42 = vpop.permute.xlu1 %2095 }
 0xb38   : > { %v2005_v39 = vsel %vm1264_vm4, %v2000_v33, 0  ;;  %v2101_v45 = vsel %vm1264_vm4, %v2096_v42, 0  ;;  %v3226_v33 = vld [vmem:[#allocation22 + $0x8] sm:$0xff]  }
 0xb39   : > { %v3261_v40 = vpop.eup %3260  ;;  %2982 = vmatpush3.bf16.msra.mxu1 %v2005_v39  ;;  %v3227_v39 = vld [vmem:[#allocation22] sm:$0xff]  }
 0xb3a   : > { %2993 = vmatprep.subr.bf16.mxu1 %v3782_v0  ;;  %v1942_v41 = vmul.f32 %v3261_v40, %v3253_v22  ;;  %v3229_v40 = vld [vmem:[%s4576_s18 + $0x10] sm:$0xff]  }
 0xb3c   : > { %v1948_v43 = vpack.c.bf16 %v1942_v41, %v1942_v41  ;;  %v2229_v46 = vsel %vm1009_vm2, %v1942_v41, 0.0 }
 0xb3d   : > { %v3263_v44 = vpop.eup %3262  ;;  %v2230_v52 = vadd.f32 %v2229_v46, %v2228_v48 }
 0xb3e   : > { %2984 = vmatmul.mubr.msk.bf16.vlgmr.msra.gmra.mxu1 %vm1009_vm2, %v1948_v43  ;;  %v1944_v47 = vmul.f32 %v3263_v44, %v3255_v25  ;;  %v2792_v25 = vld [vmem:[#allocation17] ss:$0 sm:$0xff] }
 0xb3f   : > { %2994 = vmatpush3.bf16.msra.mxu1 %v2101_v45  ;;  %2995 = vmatprep.mubr.msk.bf16.mxu1 %vm3783_vm0, %v3782_v0  ;;  %v2796_v45 = vld [vmem:[#allocation19] ss:$0 sm:$0xff] }
 0xb40   : > { %v1949_v49 = vpack.c.bf16 %v1944_v47, %v1944_v47  ;;  %v2231_v50 = vsel %vm1009_vm2, %v1944_v47, 0.0  ;;  %3007 = vmatprep.subr.bf16.mxu1 %v3782_v0  ;;  %v2797_v47 = vld [vmem:[#allocation20] ss:$0 sm:$0xff] }
 0xb41   : > { %v3265_v51 = vpop.eup %3264  ;;  %v2232_v54 = vadd.f32 %v2231_v50, %v2230_v52  ;;  %v3231_v52 = vld [vmem:[%s4576_s18] sm:$0xff]  }
 0xb42   : > { %2990 = vmatmul.mubr.msk.bf16.vlgmr.msra.gmra.mxu0 %vm1009_vm2, %v1949_v49  ;;  %v1946_v53 = vmul.f32 %v3265_v51, %v3257_v27  ;;  %v3230_v51 = vld [vmem:[%s4576_s18 + $0x8] sm:$0xff]  }
 0xb43   : > { %3003 = vmatprep.mubr.msk.bf16.mxu0 %vm3783_vm0, %v3782_v0  ;;  %3000 = vmatpush3.bf16.msra.mxu0 %v3224_v63 }
 0xb44   : > { %v1950_v55 = vpack.c.bf16 %v1946_v53, %v1946_v53  ;;  %v2233_v56 = vsel %vm1009_vm2, %v1946_v53, 0.0  ;;  %3001 = vmatprep.subr.bf16.mxu0 %v3782_v0  ;;  %v2798_v53 = vld [vmem:[#allocation23] ss:$0 sm:$0xff] }
 0xb45   : > { %v2234_v57 = vadd.f32 %v2233_v56, %v2232_v54 }
 0xb46   : > { %2996 = vmatmul.mubr.msk.bf16.vlgmr.msra.gmra.mxu1 %vm1009_vm2, %v1950_v55 }
 0xb47   : > { %3011 = vmatprep.mubr.msk.bf16.mxu1 %vm3783_vm0, %v3782_v0  ;;  %v2236_v58 = vmul.f32 0.25, %v2234_v57  ;;  %3002 = vmatpush3.bf16.msra.mxu0 %v3225_v1 }
 0xb48   : > { %3015 = vmatprep.subr.bf16.mxu0 %v3782_v0  ;;  %3008 = vmatpush3.bf16.msra.mxu1 %v3226_v33 }
 0xb49   : > { %2450 = vst.msk [vmem:[%s4453_s7] sm:$0xff] %vm1009_vm2, %v2236_v58  ;;  %3009 = vmatprep.subr.bf16.mxu1 %v3782_v0 }
 0xb4c   : > { %3010 = vmatpush3.bf16.msra.mxu1 %v3227_v39 }
 0xb96   : > { %v1993_v59 = vpop.f32.mrf.mxu0 }
 0xb97   : > { %v2143_v14 = vpack.c.bf16 %v1993_v59, %v1993_v59 }
 0xb98   : > { %v2979_v60 = vpop.f32.mrf.mxu0 }
 0xb9a   : > { %v1996_v61 = vpop.f32.mrf.mxu0 }
 0xb9c   : > { %v2980_v62 = vpop.f32.mrf.mxu0 }
 0xbfe   : > { %v2041_v2 = vpop.f32.mrf.mxu1 }
 0xbff   : > { %v2144_v4 = vpack.c.bf16 %v2041_v2, %v2041_v2 }
 0xc00   : > { %v2985_v5 = vpop.f32.mrf.mxu1 }
 0xc01   : > { %2148 = vrot.lane.b32.xlu0 %v2144_v4, %s3789_s2  ;;  %s3638_s2 = scalar_lea.vmem %s2484_s9, 128 }
 0xc02   : > { %v2044_v6 = vpop.f32.mrf.mxu1  ;;  %v2089_v7 = vpop.f32.mrf.mxu0  ;;  %p3639_p6 = scmp.ne.s32.totalorder %s2484_s9, %s3638_s2 }
 0xc03   : > { %v2145_v8 = vpack.c.bf16 %v2089_v7, %v2089_v7 }
 0xc04   : > { %v2986_v9 = vpop.f32.mrf.mxu1  ;;  %v2991_v10 = vpop.f32.mrf.mxu0  ;;  %p3640_p8 = pnand %p3639_p6, %p4657_p13 }
 0xc05   : > { %2151 = vrot.lane.b32.xlu1 %v2145_v8, %s3790_s22  ;;  %s3792_s22 = smov [#allocation26]  }
 0xc06   : > { %v2092_v3 = vpop.f32.mrf.mxu0  ;;  %v2137_v12 = vpop.f32.mrf.mxu1  ;;  %p3641_p3 = pneg %p3640_p8 }
 0xc07   : > { %v2146_v13 = vpack.c.bf16 %v2137_v12, %v2137_v12 }
 0xc08   : > { %v2992_v15 = vpop.f32.mrf.mxu0  ;;  %v2997_v16 = vpop.f32.mrf.mxu1 }
 0xc09   : > { %2154 = vrot.lane.b32.xlu0 %v2146_v13, %s3791_s29  ;;  %s3642_s29 = sshll.u32 %s3792_s22, 4  ;;  %s3643_s29 = int_to_ptr.vmem [resolvable:$false] %s3642_s29 }
 0xc0a   : > { %v2140_v17 = vpop.f32.mrf.mxu1  ;;  %s3644_s6 = scalar_lea.vmem %s3643_s29, 256  ;;  %p3645_p9 = scmp.lt.s32.totalorder %s2484_s9, %s3643_s29 }
 0xc0b   : > { %p3646_p10 = scmp.lt.s32.totalorder %s3644_s6, %s3638_s2 }
 0xc0c   : > { %v2998_v18 = vpop.f32.mrf.mxu1 }
 0xc0d   : > { %p3647_p11 = por %p3646_p10, %p3645_p9 }
 0xc0f   : > { %p3648_p2 = pnand %p3647_p11, %p3641_p3 }
 0xc73   : > { %v2149_v19 = vpop.permute.xlu0 %2148 }
 0xc74   : > { %v2158_v11 = vsel %vm1009_vm2, %v2143_v14, %v2149_v19 }
 0xc77   : > { %v2152_v20 = vpop.permute.xlu1 %2151 }
 0xc78   : > { %v2160_v21 = vsel %vm1468_vm5, %v2158_v11, %v2152_v20 }
 0xc7b   : > { %v2155_v22 = vpop.permute.xlu0 %2154 }
 0xc7c   : > { %v2162_v24 = vsel %vm1471_vm6, %v2160_v21, %v2155_v22 }
 0xc7d   : > { %3004 = vmatmul.mubr.msk.bf16.vlgmr.msra.gmra.mxu0 %vm955_vm1, %v2162_v24 }
 0xc7e   : > { %3023 = vmatprep.mubr.msk.bf16.mxu0 %vm3783_vm0, %v3782_v0 }
 0xd3d   : > { %v2222_v26 = vpop.f32.mrf.mxu0 }
 0xd3e   : > { %v2223_v27 = vadd.f32 %v2792_v25, %v2222_v26 }
 0xd3f   : > { %v3005_v28 = vpop.f32.mrf.mxu0 }
 0xd40   : > { %v2237_v29 = vadd.f32 %v2223_v27, %v4362_v23  ;;  %v3228_v23 = vld [vmem:[%s4576_s18 + $0x18] sm:$0xff]  }
 0xd41   : > { %v2225_v30 = vpop.f32.mrf.mxu0  ;;  %3016 = vmatpush3.bf16.msra.mxu0 %v3228_v23 }
 0xd42   : > { %v2238_v31 = vsel %vm955_vm1, %v2237_v29, 0.0  ;;  %3017 = vmatprep.subr.bf16.mxu0 %v3782_v0 }
 0xd43   : > { %2239 = vadd.xlane.f32.xlu1 %v2238_v31  ;;  %v3006_v32 = vpop.f32.mrf.mxu0 }
 0xd45   : > { %3018 = vmatpush3.bf16.msra.mxu0 %v3229_v40 }
 0xd46   : > { %3019 = vmatprep.subr.bf16.mxu0 %v3782_v0 }
 0xd49   : > { %3020 = vmatpush3.bf16.msra.mxu0 %v3230_v51 }
 0xd4a   : > { %3021 = vmatprep.subr.bf16.mxu0 %v3782_v0  ;;  %v2802_v0 = vld [vmem:[%s4577_s19] ss:$0 sm:$0xff] }
 0xd4d   : > { %3022 = vmatpush3.bf16.msra.mxu0 %v3231_v52 }
 0xdcc   : > { %v2240_v34 = vpop.xlane.xlu1 %2239 }
 0xdcd   : > { %v2241_v35 = vmul.f32 0.03125, %v2240_v34 }
 0xdcf   : > { %v2242_v36 = vsub.f32 %v2237_v29, %v2241_v35 }
 0xdd1   : > { %v2243_v37 = vmul.f32 %v2242_v36, %v2242_v36 }
 0xdd3   : > { %v2244_v38 = vsel %vm955_vm1, %v2243_v37, 0.0 }
 0xdd4   : > { %2245 = vadd.xlane.f32.xlu0 %v2244_v38 }
 0xe5d   : > { %v2246_v41 = vpop.xlane.xlu0 %2245 }
 0xe5e   : > { %v2247_v42 = vmul.f32 0.03125, %v2246_v41 }
 0xe60   : > { %v2248_v43 = vadd.f32 1e-05, %v2247_v42 }
 0xe62   : > { %3266 = vrsqrt.f32 %v2248_v43 }
 0xe6f   : > { %v3267_v44 = vpop.eup %3266 }
 0xe70   : > { %v2250_v46 = vmul.f32 %v3267_v44, %v2242_v36 }
 0xe72   : > { %v2258_v48 = vmul.f32 %v2796_v45, %v2250_v46 }
 0xe74   : > { %v2266_v49 = vadd.f32 %v2797_v47, %v2258_v48 }
 0xe76   : > { %v2267_v50 = vpack.c.bf16 %v2266_v49, %v2266_v49 }
 0xe78   : > { %3012 = vmatmul.mubr.msk.bf16.vlgmr.msra.gmra.mxu1 %vm955_vm1, %v2267_v50 }
 0xf38   : > { %v2328_v54 = vpop.f32.mrf.mxu1 }
 0xf39   : > { %v2329_v55 = vadd.f32 %v2798_v53, %v2328_v54 }
 0xf3a   : > { %v3013_v56 = vpop.f32.mrf.mxu1 }
 0xf3b   : > { %v2334_v57 = vmax.f32 %v2329_v55, 0.0 }
 0xf3c   : > { %v2331_v58 = vpop.f32.mrf.mxu1 }
 0xf3d   : > { %v2335_v59 = vpack.c.bf16 %v2334_v57, %v2334_v57 }
 0xf3e   : > { %v3014_v60 = vpop.f32.mrf.mxu1 }
 0xf3f   : > { %3024 = vmatmul.mubr.msk.bf16.vlgmr.msra.gmra.mxu0 %vm2375_vm7, %v2335_v59 }
 0xfff   : > { %v2413_v61 = vpop.f32.mrf.mxu0 }
0x1000   : > { %v2414_v62 = vadd.f32 %v2802_v0, %v2413_v61 }
0x1001   : > { %v3025_v63 = vpop.f32.mrf.mxu0 }
0x1002   : > { %v2419_v1 = vadd.f32 %v2414_v62, %v2266_v49 }
0x1003   : > { %v2416_v2 = vpop.f32.mrf.mxu0 }
0x1004   : > { %v2420_v4 = vsel %vm955_vm1, %v2419_v1, 0.0 }
0x1005   : > { %2421 = vadd.xlane.f32.xlu0 %v2420_v4  ;;  %v3026_v5 = vpop.f32.mrf.mxu0 }
0x108e   : > { %v2422_v6 = vpop.xlane.xlu0 %2421 }
0x108f   : > { %v2423_v7 = vmul.f32 0.03125, %v2422_v6 }
0x1091   : > { %v2424_v8 = vsub.f32 %v2419_v1, %v2423_v7 }
0x1093   : > { %v2425_v9 = vmul.f32 %v2424_v8, %v2424_v8 }
0x1095   : > { %v2426_v10 = vsel %vm955_vm1, %v2425_v9, 0.0 }
0x1096   : > { %2427 = vadd.xlane.f32.xlu1 %v2426_v10 }
0x1097   : > { %3651 = shalt.err (!%p3648_p2)
}
0x1098   : > { %s3652_s17 = scalar_lea.hbm %s2481_s28, 128  ;;  %s3656_s24 = scalar_lea.hbm %s4581_s23, 256 }
0x1099   : > { %p3653_p1 = scmp.ne.s32.totalorder %s2481_s28, %s3652_s17  ;;  %p3657_p12 = scmp.lt.s32.totalorder %s2481_s28, %s4581_s23 }
0x109a   : > { %p3658_p5 = scmp.lt.s32.totalorder %s3656_s24, %s3652_s17 }
0x109b   : > { %p3654_p4 = pnand %p3653_p1, %p4657_p13 }
0x109c   : > { %p3659_p7 = por %p3658_p5, %p3657_p12 }
0x109d   : > { %p3655_p0 = pneg %p3654_p4 }
0x109f   : > { %p3660_p6 = pnand %p3659_p7, %p3655_p0 }
0x10a1   : > { %3663 = shalt.err (!%p3660_p6)
}
0x10a2   : > { %3080 = dma.vmem_to_hbm [thread:$0]  (%p4657_p13), %s2484_s9, 128, %s2481_s28, %s2457_s12  }
0x10a3   : > { %s4658_s29 = sld [smem:[#allocation58_spill]]  ;;  %s920_s1 = scalar_lea.vmem [#allocation25], %s2756_s3 }
0x10a4   : > { %s4659_s7 = sld [smem:[#allocation59_spill]]  ;;  %s2470_s24 = sshll.u32 %s920_s1, 4  ;;  %s2471_s24 = int_to_ptr.vmem [resolvable:$true] %s2470_s24 }
0x10a5   : > { %s4660_s12 = sld [smem:[#allocation60_spill]]  ;;  %s2452_s15 = scalar_lea.sflag [#allocation4], %s4175_s11 }
0x10a6   : > { %s3664_s2 = scalar_lea.vmem %s2471_s24, 128  ;;  %s3793_s22 = smov [#allocation25]  }
0x10a7   : > { %p3665_p8 = scmp.ne.s32.totalorder %s2471_s24, %s3664_s2 }
0x10a9   : > { %v2808_v16 = vld [vmem:[%s4658_s29] ss:$0 sm:$0xff]  ;;  %p3666_p3 = pnand %p3665_p8, %p4657_p13  ;;  %s3668_s29 = sshll.u32 %s3793_s22, 4  ;;  %s3669_s29 = int_to_ptr.vmem [resolvable:$false] %s3668_s29 }
0x10aa   : > { %v2809_v18 = vld [vmem:[%s4659_s7] ss:$0 sm:$0xff]  ;;  %s3670_s3 = scalar_lea.vmem %s3669_s29, 256  ;;  %p3671_p10 = scmp.lt.s32.totalorder %s2471_s24, %s3669_s29 }
0x10ab   : > { %s2468_s13 = scalar_lea.hbm %s4660_s12, %s2812_s14  ;;  %p3667_p9 = pneg %p3666_p3 }
0x10ac   : > { %p3672_p11 = scmp.lt.s32.totalorder %s3670_s3, %s3664_s2 }
0x10ae   : > { %p3673_p2 = por %p3672_p11, %p3671_p10 }
0x10b0   : > { %p3674_p1 = pnand %p3673_p2, %p3667_p9 }
0x111f   : > { %v2428_v3 = vpop.xlane.xlu1 %2427 }
0x1120   : > { %v2429_v12 = vmul.f32 0.03125, %v2428_v3 }
0x1122   : > { %v2430_v13 = vadd.f32 1e-05, %v2429_v12 }
0x1124   : > { %3268 = vrsqrt.f32 %v2430_v13 }
0x1131   : > { %v3269_v15 = vpop.eup %3268 }
0x1132   : > { %v2432_v17 = vmul.f32 %v3269_v15, %v2424_v8 }
0x1134   : > { %v2440_v19 = vmul.f32 %v2808_v16, %v2432_v17 }
0x1136   : > { %v2448_v14 = vadd.f32 %v2809_v18, %v2440_v19 }
0x1138   : > { %2449 = vst.msk [vmem:[%s920_s1] sm:$0xff] %vm955_vm1, %v2448_v14 }
0x1139   : > { %3677 = shalt.err (!%p3674_p1)
}
0x113a   : > { %s3678_s26 = scalar_lea.hbm %s2468_s13, 128  ;;  %s3682_s6 = scalar_lea.hbm %s4660_s12, 256 }
0x113b   : > { %p3679_p4 = scmp.ne.s32.totalorder %s2468_s13, %s3678_s26  ;;  %p3683_p5 = scmp.lt.s32.totalorder %s2468_s13, %s4660_s12 }
0x113c   : > { %p3684_p7 = scmp.lt.s32.totalorder %s3682_s6, %s3678_s26 }
0x113d   : > { %p3680_p0 = pnand %p3679_p4, %p4657_p13 }
0x113e   : > { %p3685_p6 = por %p3684_p7, %p3683_p5 }
0x113f   : > { %p3681_p12 = pneg %p3680_p0 }
0x1141   : > { %p3686_p8 = pnand %p3685_p6, %p3681_p12 }
0x1143   : > { %3689 = shalt.err (!%p3686_p8)
}
0x1144   : > { %3079 = dma.vmem_to_hbm [thread:$0]  (%p4657_p13), %s2471_s24, 128, %s2468_s13, %s2452_s15  }
0x1145 PF: > { %s2495_s1 = sand.u32 1, %s3752_s4   ;;  %p4661_p3 = scmp.ne.s32.totalorder %s4635_s0, 0 }
0x1146   : > { %p4662_p9 = scmp.ge.s32.totalorder %s3764_s25, 2  ;;  %s2496_s28 = scalar_lea.sflag [#allocation4], %s2495_s1 }
0x1148   : > { %p3128_p10 = pnand %p4662_p9, %p4661_p3 }
0x114a   : > { %p3129_p11 = pneg %p3128_p10 }
0x114c   : > { %3743 = dma.done.wait (%p3129_p11), %s2496_s28, 128  }
0x114d   : > { %3745 = vsyncadd (%p3129_p11), %s2496_s28, 4294967168  ;;  %s2505_s9 = scalar_lea.sflag [#allocation27], %s2495_s1 }
0x114e   : > { %3747 = dma.done.wait (%p3129_p11), %s2505_s9, 128  }
0x114f   : > { %3749 = vsyncadd (%p3129_p11), %s2505_s9, 4294967168  ;;  %s4663_s25 = sld [smem:[#allocation40_spill]]  ;;  %s4666_s4 = smov %s3756_s30 }
0x1150   : > { %s4664_s2 = sld [smem:[#allocation39_spill]] }
0x1151   : > { %s4665_s24 = sld [smem:[#allocation41_spill]] }
0x1155   : > { %p49_p13 = scmp.ge.s32.totalorder %s4663_s25, 4  }
0x1156   : > { %s4667_s30 = smov %s4664_s2 }
0x1157   :  { %51 = sbr.rel (!%p49_p13) target bundleno = 35 (0x23), region = 231 }
0x115c   :  { %2510 = vsyncpa [#allocation3], 1 }
0x115d   :  { %2512 = vsyncpa [#allocation3 + $0x1], 1 }
0x115e   :  { %2513 = vsyncpa [#allocation6], 1 }
0x115f   :  { %2515 = vsyncpa [#allocation6 + $0x1], 1 }
0x1160   :  { %2516 = vsyncpa [#allocation9], 1 }
0x1161   :  { %2517 = vsyncpa [#allocation12], 1 }
0x1162   :  { %2518 = vsyncpa [#allocation15], 1 }
0x1163   :  { %2519 = vsyncpa [#allocation18], 1 }
0x1164   :  { %2520 = vsyncpa [#allocation21], 1 }
0x1165   :  { %2521 = vsyncpa [#allocation24], 1 }
0x1166   :  { %2522 = vsyncpa [#allocation4], 1 }
0x1167   :  { %2524 = vsyncpa [#allocation4 + $0x1], 1 }
0x1168   :  { %2525 = vsyncpa [#allocation27], 1 }
0x1169   :  { %2527 = vsyncpa [#allocation27 + $0x1], 1 }

</bundles_post_ra>
